<compile_context>
chip_gen: v5e
topology: v5e:2x2
jax: 0.10.0
libtpu: 0.0.40
codegen_flags: <defaults>
</compile_context>

<pallas_src>
import functools

import jax
import jax.numpy as jnp
from jax.experimental import pallas as pl
from jax.experimental.pallas import tpu as pltpu


def _spatial_attn_kernel(x_ref, wv_ref, mask_ref, o_ref, pool_ref, *, C, H, W, K):
    """One batch element per grid step.

    x_ref    : VMEM (1, C, H*W)            input block (lane-dense)
    wv_ref   : VMEM (2, K*K) f32           conv weight, [in_ch, kh*K+kw] (resident)
    mask_ref : VMEM (K, H*W) f32           per-kw row-boundary masks (resident)
    o_ref    : VMEM (1, C, H*W)            output block
    pool_ref : VMEM (2, H*W + 2*PAD) f32   zero-halo'd flat [avg; max] planes
    """
    HW = H * W
    P = (K - 1) // 2
    PAD = P * (W + 1)  # max |flat shift| of a KxK tap = P*W + P

    # ---- channel mean & max over the whole resident block (no per-C loops) ----
    x = x_ref[0]                                             # (C, HW), native dtype
    xf = x.astype(jnp.float32)
    avg = jnp.sum(xf, axis=0, keepdims=True) * (1.0 / C)     # (1, HW)
    mx = jnp.max(xf, axis=0, keepdims=True)                  # (1, HW)

    # ---- flat zero-halo'd pooled planes: row 0 = avg, row 1 = max ----
    zero_halo = jnp.zeros((2, PAD), jnp.float32)
    pool_ref[:, pl.ds(0, PAD)] = zero_halo
    pool_ref[:, pl.ds(PAD + HW, PAD)] = zero_halo
    pool_ref[pl.ds(0, 1), pl.ds(PAD, HW)] = avg
    pool_ref[pl.ds(1, 1), pl.ds(PAD, HW)] = mx

    # ---- 7x7 "same" conv as 49 shifted flat taps (both channels per tap) ----
    wv = wv_ref[...]                                         # (2, K*K) f32
    acc = jnp.zeros((2, HW), jnp.float32)
    for kw in range(K):
        dw = kw - P
        inner = jnp.zeros((2, HW), jnp.float32)
        for kh in range(K):
            off = PAD + (kh - P) * W + dw                    # static, >= 0
            tap = pool_ref[:, pl.ds(off, HW)]                # (2, HW)
            t = kh * K + kw
            wcol = wv[:, t:t + 1]                            # (2, 1) weight column
            inner = inner + wcol * tap
        # kill taps whose horizontal offset crossed a row boundary (kw-only)
        acc = acc + inner * mask_ref[pl.ds(kw, 1), :]
    a = jnp.sum(acc, axis=0, keepdims=True)                  # avg-chan + max-chan

    # ---- sigmoid + apply to every channel, single whole-block store ----
    att = 1.0 / (1.0 + jnp.exp(-a))                          # (1, HW) f32
    o_ref[0] = (x * att.astype(x.dtype)).astype(o_ref.dtype)


def spatial_attention_pallas(x, conv_weight):
    """x: (B, C, H, W); conv_weight: (1, 2, K, K) (PyTorch OIHW layout, no bias)."""
    b, c, h, w = x.shape
    out_ch, two, k, k2 = conv_weight.shape
    assert out_ch == 1 and two == 2 and k == k2 and k % 2 == 1, \
        "expected (1, 2, K, K) conv weight with odd K"
    p = (k - 1) // 2
    hw = h * w
    hwp = hw + 2 * p * (w + 1)

    # Lane-dense view of x (free, contiguous reshape in the wrapper).
    x2 = x.reshape(b, c, hw)

    # Conv weight as (2, K*K) f32 columns, and the K per-kw lane masks that zero
    # taps whose horizontal offset wrapped across a row boundary in flat space.
    wv = conv_weight.astype(jnp.float32).reshape(2, k * k)
    col = jnp.arange(hw, dtype=jnp.int32) % w
    dw = (jnp.arange(k, dtype=jnp.int32) - p)[:, None]                     # (K, 1)
    mask = ((col[None, :] + dw >= 0) & (col[None, :] + dw < w)).astype(jnp.float32)

    kernel = functools.partial(_spatial_attn_kernel, C=c, H=h, W=w, K=k)

    # ---- VMEM budget from real padded tile footprints, generation-aware cap ----
    def _tile_bytes(rows, cols, dtype):
        it = jnp.dtype(dtype).itemsize
        sub = max(8, 32 // it)                        # f32: 8, bf16: 16, int8: 32
        return (-(-rows // sub) * sub) * (-(-cols // 128) * 128) * it

    needed = (4 * _tile_bytes(c, hw, x.dtype)         # in + out, double-buffered
              + 2 * _tile_bytes(2, k * k, jnp.float32)
              + 2 * _tile_bytes(k, hw, jnp.float32)
              + _tile_bytes(2, hwp, jnp.float32)
              + (4 << 20))                            # headroom
    try:
        vmem_cap = int(getattr(pltpu.get_tpu_info(), "vmem_capacity_bytes", 64 << 20))
    except Exception:
        vmem_cap = 64 << 20                           # safe on every generation
    # TODO(synk): if `needed` ever exceeds `vmem_cap` (very large C*H*W), add
    # H-tiling with a (K-1)-row halo instead of relying on this clamp; and if
    # the conv taps ever dominate (huge H*W, tiny C), move the kw taps onto the
    # MXU as banded matmuls.
    vmem_limit = int(min(max(needed, 32 << 20), vmem_cap))

    out2 = pl.pallas_call(
        kernel,
        out_shape=jax.ShapeDtypeStruct((b, c, hw), x.dtype),
        grid_spec=pltpu.PrefetchScalarGridSpec(
            num_scalar_prefetch=0,
            grid=(b,),
            in_specs=[
                pl.BlockSpec((1, c, hw), lambda i: (i, 0, 0)),   # x (lane-dense)
                pl.BlockSpec((2, k * k), lambda i: (0, 0)),      # weights (resident)
                pl.BlockSpec((k, hw), lambda i: (0, 0)),         # masks (resident)
            ],
            out_specs=pl.BlockSpec((1, c, hw), lambda i: (i, 0, 0)),
            scratch_shapes=[pltpu.VMEM((2, hwp), jnp.float32)],
        ),
        compiler_params=pltpu.CompilerParams(
            dimension_semantics=("parallel",),
            vmem_limit_bytes=vmem_limit,
        ),
    )(x2, wv, mask)
    return out2.reshape(b, c, h, w)


def spatial_attention_ref(x, conv_weight):
    """Pure-JAX reference matching the PyTorch forward exactly."""
    xf = x.astype(jnp.float32)
    avg = jnp.mean(xf, axis=1, keepdims=True)
    mx = jnp.max(xf, axis=1, keepdims=True)
    cat = jnp.concatenate([avg, mx], axis=1)
    a = jax.lax.conv_general_dilated(
        cat, conv_weight.astype(jnp.float32),
        window_strides=(1, 1), padding="SAME",
        dimension_numbers=("NCHW", "OIHW", "NCHW"))
    return (jax.nn.sigmoid(a) * xf).astype(x.dtype)


if __name__ == "__main__":
    key = jax.random.PRNGKey(0)
    kx, kwt = jax.random.split(key)
    x = jax.random.normal(kx, (2, 4, 16, 16), dtype=jnp.float32)
    # Deterministic stand-in for the learned Conv2d(2, 1, 7, bias=False) weight.
    conv_w = jax.random.normal(kwt, (1, 2, 7, 7), dtype=jnp.float32) * 0.1

    out = jax.block_until_ready(spatial_attention_pallas(x, conv_w))
    ref = jax.block_until_ready(spatial_attention_ref(x, conv_w))

    assert out.shape == x.shape and out.dtype == x.dtype
    assert jnp.allclose(out, ref, atol=1e-5, rtol=1e-5), "mismatch vs reference"

    print("KERNEL_OK")
</pallas_src>

<mosaic_0001>
module attributes {stable_mosaic.version = 11 : i64} {
  func.func @_spatial_attn_kernel(%arg0: i32, %arg1: memref<1x4x256xf32, #tpu.memory_space<vmem>>, %arg2: memref<2x49xf32, #tpu.memory_space<vmem>>, %arg3: memref<7x256xf32, #tpu.memory_space<vmem>>, %arg4: memref<1x4x256xf32, #tpu.memory_space<vmem>>, %arg5: memref<2x358xf32, #tpu.memory_space<vmem>>) attributes {dimension_semantics = [#tpu.dimension_semantics<parallel>], iteration_bounds = array<i64: 2>, scalar_prefetch = 0 : i64, scratch_operands = 1 : i64, tpu.core_type = #tpu.core_type<tc>, window_params = [{transform_indices = @transform_0, window_bounds = array<i64: 1, 4, 256>}, {pipeline_mode = #tpu.pipeline_mode<synchronous>, transform_indices = @transform_1, window_bounds = array<i64: 2, 49>}, {pipeline_mode = #tpu.pipeline_mode<synchronous>, transform_indices = @transform_2, window_bounds = array<i64: 7, 256>}, {transform_indices = @transform_3, window_bounds = array<i64: 1, 4, 256>}]} {
    %c0 = arith.constant 0 : index
    %c0_0 = arith.constant 0 : index
    %c0_1 = arith.constant 0 : index
    %0 = vector.load %arg1[%c0, %c0_0, %c0_1] : memref<1x4x256xf32, #tpu.memory_space<vmem>>, vector<1x4x256xf32>
    %1 = vector.shape_cast %0 : vector<1x4x256xf32> to vector<4x256xf32>
    %cst = arith.constant dense<0.000000e+00> : vector<256xf32>
    %2 = vector.multi_reduction <add>, %1, %cst [0] : vector<4x256xf32> to vector<256xf32>
    %3 = vector.shape_cast %2 : vector<256xf32> to vector<1x256xf32>
    %cst_2 = arith.constant 2.500000e-01 : f32
    %4 = vector.broadcast %cst_2 : f32 to vector<1x256xf32>
    %5 = arith.mulf %3, %4 : vector<1x256xf32>
    %cst_3 = arith.constant dense<0xFF800000> : vector<256xf32>
    %6 = vector.multi_reduction <maximumf>, %1, %cst_3 [0] : vector<4x256xf32> to vector<256xf32>
    %7 = vector.shape_cast %6 : vector<256xf32> to vector<1x256xf32>
    %cst_4 = arith.constant 0.000000e+00 : f32
    %8 = vector.broadcast %cst_4 : f32 to vector<2x51xf32>
    %c0_5 = arith.constant 0 : index
    %c0_6 = arith.constant 0 : index
    %9 = vector.load %arg5[%c0_5, %c0_6] : memref<2x358xf32, #tpu.memory_space<vmem>>, vector<2x51xf32>
    tpu.vector_store %arg5[%c0_5, %c0_6], %8 {strides = array<i32>} : memref<2x358xf32, #tpu.memory_space<vmem>>, vector<2x51xf32>,
    %c0_7 = arith.constant 0 : index
    %c307 = arith.constant 307 : index
    %10 = vector.load %arg5[%c0_7, %c307] : memref<2x358xf32, #tpu.memory_space<vmem>>, vector<2x51xf32>
    tpu.vector_store %arg5[%c0_7, %c307], %8 {strides = array<i32>} : memref<2x358xf32, #tpu.memory_space<vmem>>, vector<2x51xf32>,
    %c0_8 = arith.constant 0 : index
    %c51 = arith.constant 51 : index
    %11 = vector.load %arg5[%c0_8, %c51] : memref<2x358xf32, #tpu.memory_space<vmem>>, vector<1x256xf32>
    tpu.vector_store %arg5[%c0_8, %c51], %5 {strides = array<i32>} : memref<2x358xf32, #tpu.memory_space<vmem>>, vector<1x256xf32>,
    %c1 = arith.constant 1 : index
    %c51_9 = arith.constant 51 : index
    %12 = vector.load %arg5[%c1, %c51_9] : memref<2x358xf32, #tpu.memory_space<vmem>>, vector<1x256xf32>
    tpu.vector_store %arg5[%c1, %c51_9], %7 {strides = array<i32>} : memref<2x358xf32, #tpu.memory_space<vmem>>, vector<1x256xf32>,
    %c0_10 = arith.constant 0 : index
    %c0_11 = arith.constant 0 : index
    %13 = vector.load %arg2[%c0_10, %c0_11] : memref<2x49xf32, #tpu.memory_space<vmem>>, vector<2x49xf32>
    %cst_12 = arith.constant 0.000000e+00 : f32
    %14 = vector.broadcast %cst_12 : f32 to vector<2x256xf32>
    %cst_13 = arith.constant 0.000000e+00 : f32
    %15 = vector.broadcast %cst_13 : f32 to vector<2x256xf32>
    %c0_14 = arith.constant 0 : index
    %c0_15 = arith.constant 0 : index
    %16 = vector.load %arg5[%c0_14, %c0_15] : memref<2x358xf32, #tpu.memory_space<vmem>>, vector<2x256xf32>
    %17 = vector.extract_strided_slice %13 {offsets = [0, 0], sizes = [2, 1], strides = [1, 1]} : vector<2x49xf32> to vector<2x1xf32>
    %18 = vector.broadcast %17 : vector<2x1xf32> to vector<2x256xf32>
    %19 = arith.mulf %18, %16 : vector<2x256xf32>
    %20 = arith.addf %15, %19 : vector<2x256xf32>
    %c0_16 = arith.constant 0 : index
    %c16 = arith.constant 16 : index
    %21 = vector.load %arg5[%c0_16, %c16] : memref<2x358xf32, #tpu.memory_space<vmem>>, vector<2x256xf32>
    %22 = vector.extract_strided_slice %13 {offsets = [0, 7], sizes = [2, 1], strides = [1, 1]} : vector<2x49xf32> to vector<2x1xf32>
    %23 = vector.broadcast %22 : vector<2x1xf32> to vector<2x256xf32>
    %24 = arith.mulf %23, %21 : vector<2x256xf32>
    %25 = arith.addf %20, %24 : vector<2x256xf32>
    %c0_17 = arith.constant 0 : index
    %c32 = arith.constant 32 : index
    %26 = vector.load %arg5[%c0_17, %c32] : memref<2x358xf32, #tpu.memory_space<vmem>>, vector<2x256xf32>
    %27 = vector.extract_strided_slice %13 {offsets = [0, 14], sizes = [2, 1], strides = [1, 1]} : vector<2x49xf32> to vector<2x1xf32>
    %28 = vector.broadcast %27 : vector<2x1xf32> to vector<2x256xf32>
    %29 = arith.mulf %28, %26 : vector<2x256xf32>
    %30 = arith.addf %25, %29 : vector<2x256xf32>
    %c0_18 = arith.constant 0 : index
    %c48 = arith.constant 48 : index
    %31 = vector.load %arg5[%c0_18, %c48] : memref<2x358xf32, #tpu.memory_space<vmem>>, vector<2x256xf32>
    %32 = vector.extract_strided_slice %13 {offsets = [0, 21], sizes = [2, 1], strides = [1, 1]} : vector<2x49xf32> to vector<2x1xf32>
    %33 = vector.broadcast %32 : vector<2x1xf32> to vector<2x256xf32>
    %34 = arith.mulf %33, %31 : vector<2x256xf32>
    %35 = arith.addf %30, %34 : vector<2x256xf32>
    %c0_19 = arith.constant 0 : index
    %c64 = arith.constant 64 : index
    %36 = vector.load %arg5[%c0_19, %c64] : memref<2x358xf32, #tpu.memory_space<vmem>>, vector<2x256xf32>
    %37 = vector.extract_strided_slice %13 {offsets = [0, 28], sizes = [2, 1], strides = [1, 1]} : vector<2x49xf32> to vector<2x1xf32>
    %38 = vector.broadcast %37 : vector<2x1xf32> to vector<2x256xf32>
    %39 = arith.mulf %38, %36 : vector<2x256xf32>
    %40 = arith.addf %35, %39 : vector<2x256xf32>
    %c0_20 = arith.constant 0 : index
    %c80 = arith.constant 80 : index
    %41 = vector.load %arg5[%c0_20, %c80] : memref<2x358xf32, #tpu.memory_space<vmem>>, vector<2x256xf32>
    %42 = vector.extract_strided_slice %13 {offsets = [0, 35], sizes = [2, 1], strides = [1, 1]} : vector<2x49xf32> to vector<2x1xf32>
    %43 = vector.broadcast %42 : vector<2x1xf32> to vector<2x256xf32>
    %44 = arith.mulf %43, %41 : vector<2x256xf32>
    %45 = arith.addf %40, %44 : vector<2x256xf32>
    %c0_21 = arith.constant 0 : index
    %c96 = arith.constant 96 : index
    %46 = vector.load %arg5[%c0_21, %c96] : memref<2x358xf32, #tpu.memory_space<vmem>>, vector<2x256xf32>
    %47 = vector.extract_strided_slice %13 {offsets = [0, 42], sizes = [2, 1], strides = [1, 1]} : vector<2x49xf32> to vector<2x1xf32>
    %48 = vector.broadcast %47 : vector<2x1xf32> to vector<2x256xf32>
    %49 = arith.mulf %48, %46 : vector<2x256xf32>
    %50 = arith.addf %45, %49 : vector<2x256xf32>
    %c0_22 = arith.constant 0 : index
    %c0_23 = arith.constant 0 : index
    %51 = vector.load %arg3[%c0_22, %c0_23] : memref<7x256xf32, #tpu.memory_space<vmem>>, vector<1x256xf32>
    %52 = vector.broadcast %51 : vector<1x256xf32> to vector<2x256xf32>
    %53 = arith.mulf %50, %52 : vector<2x256xf32>
    %54 = arith.addf %14, %53 : vector<2x256xf32>
    %cst_24 = arith.constant 0.000000e+00 : f32
    %55 = vector.broadcast %cst_24 : f32 to vector<2x256xf32>
    %c0_25 = arith.constant 0 : index
    %c1_26 = arith.constant 1 : index
    %56 = vector.load %arg5[%c0_25, %c1_26] : memref<2x358xf32, #tpu.memory_space<vmem>>, vector<2x256xf32>
    %57 = vector.extract_strided_slice %13 {offsets = [0, 1], sizes = [2, 1], strides = [1, 1]} : vector<2x49xf32> to vector<2x1xf32>
    %58 = vector.broadcast %57 : vector<2x1xf32> to vector<2x256xf32>
    %59 = arith.mulf %58, %56 : vector<2x256xf32>
    %60 = arith.addf %55, %59 : vector<2x256xf32>
    %c0_27 = arith.constant 0 : index
    %c17 = arith.constant 17 : index
    %61 = vector.load %arg5[%c0_27, %c17] : memref<2x358xf32, #tpu.memory_space<vmem>>, vector<2x256xf32>
    %62 = vector.extract_strided_slice %13 {offsets = [0, 8], sizes = [2, 1], strides = [1, 1]} : vector<2x49xf32> to vector<2x1xf32>
    %63 = vector.broadcast %62 : vector<2x1xf32> to vector<2x256xf32>
    %64 = arith.mulf %63, %61 : vector<2x256xf32>
    %65 = arith.addf %60, %64 : vector<2x256xf32>
    %c0_28 = arith.constant 0 : index
    %c33 = arith.constant 33 : index
    %66 = vector.load %arg5[%c0_28, %c33] : memref<2x358xf32, #tpu.memory_space<vmem>>, vector<2x256xf32>
    %67 = vector.extract_strided_slice %13 {offsets = [0, 15], sizes = [2, 1], strides = [1, 1]} : vector<2x49xf32> to vector<2x1xf32>
    %68 = vector.broadcast %67 : vector<2x1xf32> to vector<2x256xf32>
    %69 = arith.mulf %68, %66 : vector<2x256xf32>
    %70 = arith.addf %65, %69 : vector<2x256xf32>
    %c0_29 = arith.constant 0 : index
    %c49 = arith.constant 49 : index
    %71 = vector.load %arg5[%c0_29, %c49] : memref<2x358xf32, #tpu.memory_space<vmem>>, vector<2x256xf32>
    %72 = vector.extract_strided_slice %13 {offsets = [0, 22], sizes = [2, 1], strides = [1, 1]} : vector<2x49xf32> to vector<2x1xf32>
    %73 = vector.broadcast %72 : vector<2x1xf32> to vector<2x256xf32>
    %74 = arith.mulf %73, %71 : vector<2x256xf32>
    %75 = arith.addf %70, %74 : vector<2x256xf32>
    %c0_30 = arith.constant 0 : index
    %c65 = arith.constant 65 : index
    %76 = vector.load %arg5[%c0_30, %c65] : memref<2x358xf32, #tpu.memory_space<vmem>>, vector<2x256xf32>
    %77 = vector.extract_strided_slice %13 {offsets = [0, 29], sizes = [2, 1], strides = [1, 1]} : vector<2x49xf32> to vector<2x1xf32>
    %78 = vector.broadcast %77 : vector<2x1xf32> to vector<2x256xf32>
    %79 = arith.mulf %78, %76 : vector<2x256xf32>
    %80 = arith.addf %75, %79 : vector<2x256xf32>
    %c0_31 = arith.constant 0 : index
    %c81 = arith.constant 81 : index
    %81 = vector.load %arg5[%c0_31, %c81] : memref<2x358xf32, #tpu.memory_space<vmem>>, vector<2x256xf32>
    %82 = vector.extract_strided_slice %13 {offsets = [0, 36], sizes = [2, 1], strides = [1, 1]} : vector<2x49xf32> to vector<2x1xf32>
    %83 = vector.broadcast %82 : vector<2x1xf32> to vector<2x256xf32>
    %84 = arith.mulf %83, %81 : vector<2x256xf32>
    %85 = arith.addf %80, %84 : vector<2x256xf32>
    %c0_32 = arith.constant 0 : index
    %c97 = arith.constant 97 : index
    %86 = vector.load %arg5[%c0_32, %c97] : memref<2x358xf32, #tpu.memory_space<vmem>>, vector<2x256xf32>
    %87 = vector.extract_strided_slice %13 {offsets = [0, 43], sizes = [2, 1], strides = [1, 1]} : vector<2x49xf32> to vector<2x1xf32>
    %88 = vector.broadcast %87 : vector<2x1xf32> to vector<2x256xf32>
    %89 = arith.mulf %88, %86 : vector<2x256xf32>
    %90 = arith.addf %85, %89 : vector<2x256xf32>
    %c1_33 = arith.constant 1 : index
    %c0_34 = arith.constant 0 : index
    %91 = vector.load %arg3[%c1_33, %c0_34] : memref<7x256xf32, #tpu.memory_space<vmem>>, vector<1x256xf32>
    %92 = vector.broadcast %91 : vector<1x256xf32> to vector<2x256xf32>
    %93 = arith.mulf %90, %92 : vector<2x256xf32>
    %94 = arith.addf %54, %93 : vector<2x256xf32>
    %cst_35 = arith.constant 0.000000e+00 : f32
    %95 = vector.broadcast %cst_35 : f32 to vector<2x256xf32>
    %c0_36 = arith.constant 0 : index
    %c2 = arith.constant 2 : index
    %96 = vector.load %arg5[%c0_36, %c2] : memref<2x358xf32, #tpu.memory_space<vmem>>, vector<2x256xf32>
    %97 = vector.extract_strided_slice %13 {offsets = [0, 2], sizes = [2, 1], strides = [1, 1]} : vector<2x49xf32> to vector<2x1xf32>
    %98 = vector.broadcast %97 : vector<2x1xf32> to vector<2x256xf32>
    %99 = arith.mulf %98, %96 : vector<2x256xf32>
    %100 = arith.addf %95, %99 : vector<2x256xf32>
    %c0_37 = arith.constant 0 : index
    %c18 = arith.constant 18 : index
    %101 = vector.load %arg5[%c0_37, %c18] : memref<2x358xf32, #tpu.memory_space<vmem>>, vector<2x256xf32>
    %102 = vector.extract_strided_slice %13 {offsets = [0, 9], sizes = [2, 1], strides = [1, 1]} : vector<2x49xf32> to vector<2x1xf32>
    %103 = vector.broadcast %102 : vector<2x1xf32> to vector<2x256xf32>
    %104 = arith.mulf %103, %101 : vector<2x256xf32>
    %105 = arith.addf %100, %104 : vector<2x256xf32>
    %c0_38 = arith.constant 0 : index
    %c34 = arith.constant 34 : index
    %106 = vector.load %arg5[%c0_38, %c34] : memref<2x358xf32, #tpu.memory_space<vmem>>, vector<2x256xf32>
    %107 = vector.extract_strided_slice %13 {offsets = [0, 16], sizes = [2, 1], strides = [1, 1]} : vector<2x49xf32> to vector<2x1xf32>
    %108 = vector.broadcast %107 : vector<2x1xf32> to vector<2x256xf32>
    %109 = arith.mulf %108, %106 : vector<2x256xf32>
    %110 = arith.addf %105, %109 : vector<2x256xf32>
    %c0_39 = arith.constant 0 : index
    %c50 = arith.constant 50 : index
    %111 = vector.load %arg5[%c0_39, %c50] : memref<2x358xf32, #tpu.memory_space<vmem>>, vector<2x256xf32>
    %112 = vector.extract_strided_slice %13 {offsets = [0, 23], sizes = [2, 1], strides = [1, 1]} : vector<2x49xf32> to vector<2x1xf32>
    %113 = vector.broadcast %112 : vector<2x1xf32> to vector<2x256xf32>
    %114 = arith.mulf %113, %111 : vector<2x256xf32>
    %115 = arith.addf %110, %114 : vector<2x256xf32>
    %c0_40 = arith.constant 0 : index
    %c66 = arith.constant 66 : index
    %116 = vector.load %arg5[%c0_40, %c66] : memref<2x358xf32, #tpu.memory_space<vmem>>, vector<2x256xf32>
    %117 = vector.extract_strided_slice %13 {offsets = [0, 30], sizes = [2, 1], strides = [1, 1]} : vector<2x49xf32> to vector<2x1xf32>
    %118 = vector.broadcast %117 : vector<2x1xf32> to vector<2x256xf32>
    %119 = arith.mulf %118, %116 : vector<2x256xf32>
    %120 = arith.addf %115, %119 : vector<2x256xf32>
    %c0_41 = arith.constant 0 : index
    %c82 = arith.constant 82 : index
    %121 = vector.load %arg5[%c0_41, %c82] : memref<2x358xf32, #tpu.memory_space<vmem>>, vector<2x256xf32>
    %122 = vector.extract_strided_slice %13 {offsets = [0, 37], sizes = [2, 1], strides = [1, 1]} : vector<2x49xf32> to vector<2x1xf32>
    %123 = vector.broadcast %122 : vector<2x1xf32> to vector<2x256xf32>
    %124 = arith.mulf %123, %121 : vector<2x256xf32>
    %125 = arith.addf %120, %124 : vector<2x256xf32>
    %c0_42 = arith.constant 0 : index
    %c98 = arith.constant 98 : index
    %126 = vector.load %arg5[%c0_42, %c98] : memref<2x358xf32, #tpu.memory_space<vmem>>, vector<2x256xf32>
    %127 = vector.extract_strided_slice %13 {offsets = [0, 44], sizes = [2, 1], strides = [1, 1]} : vector<2x49xf32> to vector<2x1xf32>
    %128 = vector.broadcast %127 : vector<2x1xf32> to vector<2x256xf32>
    %129 = arith.mulf %128, %126 : vector<2x256xf32>
    %130 = arith.addf %125, %129 : vector<2x256xf32>
    %c2_43 = arith.constant 2 : index
    %c0_44 = arith.constant 0 : index
    %131 = vector.load %arg3[%c2_43, %c0_44] : memref<7x256xf32, #tpu.memory_space<vmem>>, vector<1x256xf32>
    %132 = vector.broadcast %131 : vector<1x256xf32> to vector<2x256xf32>
    %133 = arith.mulf %130, %132 : vector<2x256xf32>
    %134 = arith.addf %94, %133 : vector<2x256xf32>
    %cst_45 = arith.constant 0.000000e+00 : f32
    %135 = vector.broadcast %cst_45 : f32 to vector<2x256xf32>
    %c0_46 = arith.constant 0 : index
    %c3 = arith.constant 3 : index
    %136 = vector.load %arg5[%c0_46, %c3] : memref<2x358xf32, #tpu.memory_space<vmem>>, vector<2x256xf32>
    %137 = vector.extract_strided_slice %13 {offsets = [0, 3], sizes = [2, 1], strides = [1, 1]} : vector<2x49xf32> to vector<2x1xf32>
    %138 = vector.broadcast %137 : vector<2x1xf32> to vector<2x256xf32>
    %139 = arith.mulf %138, %136 : vector<2x256xf32>
    %140 = arith.addf %135, %139 : vector<2x256xf32>
    %c0_47 = arith.constant 0 : index
    %c19 = arith.constant 19 : index
    %141 = vector.load %arg5[%c0_47, %c19] : memref<2x358xf32, #tpu.memory_space<vmem>>, vector<2x256xf32>
    %142 = vector.extract_strided_slice %13 {offsets = [0, 10], sizes = [2, 1], strides = [1, 1]} : vector<2x49xf32> to vector<2x1xf32>
    %143 = vector.broadcast %142 : vector<2x1xf32> to vector<2x256xf32>
    %144 = arith.mulf %143, %141 : vector<2x256xf32>
    %145 = arith.addf %140, %144 : vector<2x256xf32>
    %c0_48 = arith.constant 0 : index
    %c35 = arith.constant 35 : index
    %146 = vector.load %arg5[%c0_48, %c35] : memref<2x358xf32, #tpu.memory_space<vmem>>, vector<2x256xf32>
    %147 = vector.extract_strided_slice %13 {offsets = [0, 17], sizes = [2, 1], strides = [1, 1]} : vector<2x49xf32> to vector<2x1xf32>
    %148 = vector.broadcast %147 : vector<2x1xf32> to vector<2x256xf32>
    %149 = arith.mulf %148, %146 : vector<2x256xf32>
    %150 = arith.addf %145, %149 : vector<2x256xf32>
    %c0_49 = arith.constant 0 : index
    %c51_50 = arith.constant 51 : index
    %151 = vector.load %arg5[%c0_49, %c51_50] : memref<2x358xf32, #tpu.memory_space<vmem>>, vector<2x256xf32>
    %152 = vector.extract_strided_slice %13 {offsets = [0, 24], sizes = [2, 1], strides = [1, 1]} : vector<2x49xf32> to vector<2x1xf32>
    %153 = vector.broadcast %152 : vector<2x1xf32> to vector<2x256xf32>
    %154 = arith.mulf %153, %151 : vector<2x256xf32>
    %155 = arith.addf %150, %154 : vector<2x256xf32>
    %c0_51 = arith.constant 0 : index
    %c67 = arith.constant 67 : index
    %156 = vector.load %arg5[%c0_51, %c67] : memref<2x358xf32, #tpu.memory_space<vmem>>, vector<2x256xf32>
    %157 = vector.extract_strided_slice %13 {offsets = [0, 31], sizes = [2, 1], strides = [1, 1]} : vector<2x49xf32> to vector<2x1xf32>
    %158 = vector.broadcast %157 : vector<2x1xf32> to vector<2x256xf32>
    %159 = arith.mulf %158, %156 : vector<2x256xf32>
    %160 = arith.addf %155, %159 : vector<2x256xf32>
    %c0_52 = arith.constant 0 : index
    %c83 = arith.constant 83 : index
    %161 = vector.load %arg5[%c0_52, %c83] : memref<2x358xf32, #tpu.memory_space<vmem>>, vector<2x256xf32>
    %162 = vector.extract_strided_slice %13 {offsets = [0, 38], sizes = [2, 1], strides = [1, 1]} : vector<2x49xf32> to vector<2x1xf32>
    %163 = vector.broadcast %162 : vector<2x1xf32> to vector<2x256xf32>
    %164 = arith.mulf %163, %161 : vector<2x256xf32>
    %165 = arith.addf %160, %164 : vector<2x256xf32>
    %c0_53 = arith.constant 0 : index
    %c99 = arith.constant 99 : index
    %166 = vector.load %arg5[%c0_53, %c99] : memref<2x358xf32, #tpu.memory_space<vmem>>, vector<2x256xf32>
    %167 = vector.extract_strided_slice %13 {offsets = [0, 45], sizes = [2, 1], strides = [1, 1]} : vector<2x49xf32> to vector<2x1xf32>
    %168 = vector.broadcast %167 : vector<2x1xf32> to vector<2x256xf32>
    %169 = arith.mulf %168, %166 : vector<2x256xf32>
    %170 = arith.addf %165, %169 : vector<2x256xf32>
    %c3_54 = arith.constant 3 : index
    %c0_55 = arith.constant 0 : index
    %171 = vector.load %arg3[%c3_54, %c0_55] : memref<7x256xf32, #tpu.memory_space<vmem>>, vector<1x256xf32>
    %172 = vector.broadcast %171 : vector<1x256xf32> to vector<2x256xf32>
    %173 = arith.mulf %170, %172 : vector<2x256xf32>
    %174 = arith.addf %134, %173 : vector<2x256xf32>
    %cst_56 = arith.constant 0.000000e+00 : f32
    %175 = vector.broadcast %cst_56 : f32 to vector<2x256xf32>
    %c0_57 = arith.constant 0 : index
    %c4 = arith.constant 4 : index
    %176 = vector.load %arg5[%c0_57, %c4] : memref<2x358xf32, #tpu.memory_space<vmem>>, vector<2x256xf32>
    %177 = vector.extract_strided_slice %13 {offsets = [0, 4], sizes = [2, 1], strides = [1, 1]} : vector<2x49xf32> to vector<2x1xf32>
    %178 = vector.broadcast %177 : vector<2x1xf32> to vector<2x256xf32>
    %179 = arith.mulf %178, %176 : vector<2x256xf32>
    %180 = arith.addf %175, %179 : vector<2x256xf32>
    %c0_58 = arith.constant 0 : index
    %c20 = arith.constant 20 : index
    %181 = vector.load %arg5[%c0_58, %c20] : memref<2x358xf32, #tpu.memory_space<vmem>>, vector<2x256xf32>
    %182 = vector.extract_strided_slice %13 {offsets = [0, 11], sizes = [2, 1], strides = [1, 1]} : vector<2x49xf32> to vector<2x1xf32>
    %183 = vector.broadcast %182 : vector<2x1xf32> to vector<2x256xf32>
    %184 = arith.mulf %183, %181 : vector<2x256xf32>
    %185 = arith.addf %180, %184 : vector<2x256xf32>
    %c0_59 = arith.constant 0 : index
    %c36 = arith.constant 36 : index
    %186 = vector.load %arg5[%c0_59, %c36] : memref<2x358xf32, #tpu.memory_space<vmem>>, vector<2x256xf32>
    %187 = vector.extract_strided_slice %13 {offsets = [0, 18], sizes = [2, 1], strides = [1, 1]} : vector<2x49xf32> to vector<2x1xf32>
    %188 = vector.broadcast %187 : vector<2x1xf32> to vector<2x256xf32>
    %189 = arith.mulf %188, %186 : vector<2x256xf32>
    %190 = arith.addf %185, %189 : vector<2x256xf32>
    %c0_60 = arith.constant 0 : index
    %c52 = arith.constant 52 : index
    %191 = vector.load %arg5[%c0_60, %c52] : memref<2x358xf32, #tpu.memory_space<vmem>>, vector<2x256xf32>
    %192 = vector.extract_strided_slice %13 {offsets = [0, 25], sizes = [2, 1], strides = [1, 1]} : vector<2x49xf32> to vector<2x1xf32>
    %193 = vector.broadcast %192 : vector<2x1xf32> to vector<2x256xf32>
    %194 = arith.mulf %193, %191 : vector<2x256xf32>
    %195 = arith.addf %190, %194 : vector<2x256xf32>
    %c0_61 = arith.constant 0 : index
    %c68 = arith.constant 68 : index
    %196 = vector.load %arg5[%c0_61, %c68] : memref<2x358xf32, #tpu.memory_space<vmem>>, vector<2x256xf32>
    %197 = vector.extract_strided_slice %13 {offsets = [0, 32], sizes = [2, 1], strides = [1, 1]} : vector<2x49xf32> to vector<2x1xf32>
    %198 = vector.broadcast %197 : vector<2x1xf32> to vector<2x256xf32>
    %199 = arith.mulf %198, %196 : vector<2x256xf32>
    %200 = arith.addf %195, %199 : vector<2x256xf32>
    %c0_62 = arith.constant 0 : index
    %c84 = arith.constant 84 : index
    %201 = vector.load %arg5[%c0_62, %c84] : memref<2x358xf32, #tpu.memory_space<vmem>>, vector<2x256xf32>
    %202 = vector.extract_strided_slice %13 {offsets = [0, 39], sizes = [2, 1], strides = [1, 1]} : vector<2x49xf32> to vector<2x1xf32>
    %203 = vector.broadcast %202 : vector<2x1xf32> to vector<2x256xf32>
    %204 = arith.mulf %203, %201 : vector<2x256xf32>
    %205 = arith.addf %200, %204 : vector<2x256xf32>
    %c0_63 = arith.constant 0 : index
    %c100 = arith.constant 100 : index
    %206 = vector.load %arg5[%c0_63, %c100] : memref<2x358xf32, #tpu.memory_space<vmem>>, vector<2x256xf32>
    %207 = vector.extract_strided_slice %13 {offsets = [0, 46], sizes = [2, 1], strides = [1, 1]} : vector<2x49xf32> to vector<2x1xf32>
    %208 = vector.broadcast %207 : vector<2x1xf32> to vector<2x256xf32>
    %209 = arith.mulf %208, %206 : vector<2x256xf32>
    %210 = arith.addf %205, %209 : vector<2x256xf32>
    %c4_64 = arith.constant 4 : index
    %c0_65 = arith.constant 0 : index
    %211 = vector.load %arg3[%c4_64, %c0_65] : memref<7x256xf32, #tpu.memory_space<vmem>>, vector<1x256xf32>
    %212 = vector.broadcast %211 : vector<1x256xf32> to vector<2x256xf32>
    %213 = arith.mulf %210, %212 : vector<2x256xf32>
    %214 = arith.addf %174, %213 : vector<2x256xf32>
    %cst_66 = arith.constant 0.000000e+00 : f32
    %215 = vector.broadcast %cst_66 : f32 to vector<2x256xf32>
    %c0_67 = arith.constant 0 : index
    %c5 = arith.constant 5 : index
    %216 = vector.load %arg5[%c0_67, %c5] : memref<2x358xf32, #tpu.memory_space<vmem>>, vector<2x256xf32>
    %217 = vector.extract_strided_slice %13 {offsets = [0, 5], sizes = [2, 1], strides = [1, 1]} : vector<2x49xf32> to vector<2x1xf32>
    %218 = vector.broadcast %217 : vector<2x1xf32> to vector<2x256xf32>
    %219 = arith.mulf %218, %216 : vector<2x256xf32>
    %220 = arith.addf %215, %219 : vector<2x256xf32>
    %c0_68 = arith.constant 0 : index
    %c21 = arith.constant 21 : index
    %221 = vector.load %arg5[%c0_68, %c21] : memref<2x358xf32, #tpu.memory_space<vmem>>, vector<2x256xf32>
    %222 = vector.extract_strided_slice %13 {offsets = [0, 12], sizes = [2, 1], strides = [1, 1]} : vector<2x49xf32> to vector<2x1xf32>
    %223 = vector.broadcast %222 : vector<2x1xf32> to vector<2x256xf32>
    %224 = arith.mulf %223, %221 : vector<2x256xf32>
    %225 = arith.addf %220, %224 : vector<2x256xf32>
    %c0_69 = arith.constant 0 : index
    %c37 = arith.constant 37 : index
    %226 = vector.load %arg5[%c0_69, %c37] : memref<2x358xf32, #tpu.memory_space<vmem>>, vector<2x256xf32>
    %227 = vector.extract_strided_slice %13 {offsets = [0, 19], sizes = [2, 1], strides = [1, 1]} : vector<2x49xf32> to vector<2x1xf32>
    %228 = vector.broadcast %227 : vector<2x1xf32> to vector<2x256xf32>
    %229 = arith.mulf %228, %226 : vector<2x256xf32>
    %230 = arith.addf %225, %229 : vector<2x256xf32>
    %c0_70 = arith.constant 0 : index
    %c53 = arith.constant 53 : index
    %231 = vector.load %arg5[%c0_70, %c53] : memref<2x358xf32, #tpu.memory_space<vmem>>, vector<2x256xf32>
    %232 = vector.extract_strided_slice %13 {offsets = [0, 26], sizes = [2, 1], strides = [1, 1]} : vector<2x49xf32> to vector<2x1xf32>
    %233 = vector.broadcast %232 : vector<2x1xf32> to vector<2x256xf32>
    %234 = arith.mulf %233, %231 : vector<2x256xf32>
    %235 = arith.addf %230, %234 : vector<2x256xf32>
    %c0_71 = arith.constant 0 : index
    %c69 = arith.constant 69 : index
    %236 = vector.load %arg5[%c0_71, %c69] : memref<2x358xf32, #tpu.memory_space<vmem>>, vector<2x256xf32>
    %237 = vector.extract_strided_slice %13 {offsets = [0, 33], sizes = [2, 1], strides = [1, 1]} : vector<2x49xf32> to vector<2x1xf32>
    %238 = vector.broadcast %237 : vector<2x1xf32> to vector<2x256xf32>
    %239 = arith.mulf %238, %236 : vector<2x256xf32>
    %240 = arith.addf %235, %239 : vector<2x256xf32>
    %c0_72 = arith.constant 0 : index
    %c85 = arith.constant 85 : index
    %241 = vector.load %arg5[%c0_72, %c85] : memref<2x358xf32, #tpu.memory_space<vmem>>, vector<2x256xf32>
    %242 = vector.extract_strided_slice %13 {offsets = [0, 40], sizes = [2, 1], strides = [1, 1]} : vector<2x49xf32> to vector<2x1xf32>
    %243 = vector.broadcast %242 : vector<2x1xf32> to vector<2x256xf32>
    %244 = arith.mulf %243, %241 : vector<2x256xf32>
    %245 = arith.addf %240, %244 : vector<2x256xf32>
    %c0_73 = arith.constant 0 : index
    %c101 = arith.constant 101 : index
    %246 = vector.load %arg5[%c0_73, %c101] : memref<2x358xf32, #tpu.memory_space<vmem>>, vector<2x256xf32>
    %247 = vector.extract_strided_slice %13 {offsets = [0, 47], sizes = [2, 1], strides = [1, 1]} : vector<2x49xf32> to vector<2x1xf32>
    %248 = vector.broadcast %247 : vector<2x1xf32> to vector<2x256xf32>
    %249 = arith.mulf %248, %246 : vector<2x256xf32>
    %250 = arith.addf %245, %249 : vector<2x256xf32>
    %c5_74 = arith.constant 5 : index
    %c0_75 = arith.constant 0 : index
    %251 = vector.load %arg3[%c5_74, %c0_75] : memref<7x256xf32, #tpu.memory_space<vmem>>, vector<1x256xf32>
    %252 = vector.broadcast %251 : vector<1x256xf32> to vector<2x256xf32>
    %253 = arith.mulf %250, %252 : vector<2x256xf32>
    %254 = arith.addf %214, %253 : vector<2x256xf32>
    %cst_76 = arith.constant 0.000000e+00 : f32
    %255 = vector.broadcast %cst_76 : f32 to vector<2x256xf32>
    %c0_77 = arith.constant 0 : index
    %c6 = arith.constant 6 : index
    %256 = vector.load %arg5[%c0_77, %c6] : memref<2x358xf32, #tpu.memory_space<vmem>>, vector<2x256xf32>
    %257 = vector.extract_strided_slice %13 {offsets = [0, 6], sizes = [2, 1], strides = [1, 1]} : vector<2x49xf32> to vector<2x1xf32>
    %258 = vector.broadcast %257 : vector<2x1xf32> to vector<2x256xf32>
    %259 = arith.mulf %258, %256 : vector<2x256xf32>
    %260 = arith.addf %255, %259 : vector<2x256xf32>
    %c0_78 = arith.constant 0 : index
    %c22 = arith.constant 22 : index
    %261 = vector.load %arg5[%c0_78, %c22] : memref<2x358xf32, #tpu.memory_space<vmem>>, vector<2x256xf32>
    %262 = vector.extract_strided_slice %13 {offsets = [0, 13], sizes = [2, 1], strides = [1, 1]} : vector<2x49xf32> to vector<2x1xf32>
    %263 = vector.broadcast %262 : vector<2x1xf32> to vector<2x256xf32>
    %264 = arith.mulf %263, %261 : vector<2x256xf32>
    %265 = arith.addf %260, %264 : vector<2x256xf32>
    %c0_79 = arith.constant 0 : index
    %c38 = arith.constant 38 : index
    %266 = vector.load %arg5[%c0_79, %c38] : memref<2x358xf32, #tpu.memory_space<vmem>>, vector<2x256xf32>
    %267 = vector.extract_strided_slice %13 {offsets = [0, 20], sizes = [2, 1], strides = [1, 1]} : vector<2x49xf32> to vector<2x1xf32>
    %268 = vector.broadcast %267 : vector<2x1xf32> to vector<2x256xf32>
    %269 = arith.mulf %268, %266 : vector<2x256xf32>
    %270 = arith.addf %265, %269 : vector<2x256xf32>
    %c0_80 = arith.constant 0 : index
    %c54 = arith.constant 54 : index
    %271 = vector.load %arg5[%c0_80, %c54] : memref<2x358xf32, #tpu.memory_space<vmem>>, vector<2x256xf32>
    %272 = vector.extract_strided_slice %13 {offsets = [0, 27], sizes = [2, 1], strides = [1, 1]} : vector<2x49xf32> to vector<2x1xf32>
    %273 = vector.broadcast %272 : vector<2x1xf32> to vector<2x256xf32>
    %274 = arith.mulf %273, %271 : vector<2x256xf32>
    %275 = arith.addf %270, %274 : vector<2x256xf32>
    %c0_81 = arith.constant 0 : index
    %c70 = arith.constant 70 : index
    %276 = vector.load %arg5[%c0_81, %c70] : memref<2x358xf32, #tpu.memory_space<vmem>>, vector<2x256xf32>
    %277 = vector.extract_strided_slice %13 {offsets = [0, 34], sizes = [2, 1], strides = [1, 1]} : vector<2x49xf32> to vector<2x1xf32>
    %278 = vector.broadcast %277 : vector<2x1xf32> to vector<2x256xf32>
    %279 = arith.mulf %278, %276 : vector<2x256xf32>
    %280 = arith.addf %275, %279 : vector<2x256xf32>
    %c0_82 = arith.constant 0 : index
    %c86 = arith.constant 86 : index
    %281 = vector.load %arg5[%c0_82, %c86] : memref<2x358xf32, #tpu.memory_space<vmem>>, vector<2x256xf32>
    %282 = vector.extract_strided_slice %13 {offsets = [0, 41], sizes = [2, 1], strides = [1, 1]} : vector<2x49xf32> to vector<2x1xf32>
    %283 = vector.broadcast %282 : vector<2x1xf32> to vector<2x256xf32>
    %284 = arith.mulf %283, %281 : vector<2x256xf32>
    %285 = arith.addf %280, %284 : vector<2x256xf32>
    %c0_83 = arith.constant 0 : index
    %c102 = arith.constant 102 : index
    %286 = vector.load %arg5[%c0_83, %c102] : memref<2x358xf32, #tpu.memory_space<vmem>>, vector<2x256xf32>
    %287 = vector.extract_strided_slice %13 {offsets = [0, 48], sizes = [2, 1], strides = [1, 1]} : vector<2x49xf32> to vector<2x1xf32>
    %288 = vector.broadcast %287 : vector<2x1xf32> to vector<2x256xf32>
    %289 = arith.mulf %288, %286 : vector<2x256xf32>
    %290 = arith.addf %285, %289 : vector<2x256xf32>
    %c6_84 = arith.constant 6 : index
    %c0_85 = arith.constant 0 : index
    %291 = vector.load %arg3[%c6_84, %c0_85] : memref<7x256xf32, #tpu.memory_space<vmem>>, vector<1x256xf32>
    %292 = vector.broadcast %291 : vector<1x256xf32> to vector<2x256xf32>
    %293 = arith.mulf %290, %292 : vector<2x256xf32>
    %294 = arith.addf %254, %293 : vector<2x256xf32>
    %cst_86 = arith.constant dense<0.000000e+00> : vector<256xf32>
    %295 = vector.multi_reduction <add>, %294, %cst_86 [0] : vector<2x256xf32> to vector<256xf32>
    %296 = vector.shape_cast %295 : vector<256xf32> to vector<1x256xf32>
    %cst_87 = arith.constant 0.000000e+00 : f32
    %297 = vector.broadcast %cst_87 : f32 to vector<1x256xf32>
    %298 = arith.subf %297, %296 : vector<1x256xf32>
    %299 = math.exp %298 : vector<1x256xf32>
    %cst_88 = arith.constant 1.000000e+00 : f32
    %300 = vector.broadcast %cst_88 : f32 to vector<1x256xf32>
    %301 = arith.addf %300, %299 : vector<1x256xf32>
    %cst_89 = arith.constant 1.000000e+00 : f32
    %302 = vector.broadcast %cst_89 : f32 to vector<1x256xf32>
    %303 = arith.divf %302, %301 : vector<1x256xf32>
    %304 = vector.broadcast %303 : vector<1x256xf32> to vector<4x256xf32>
    %305 = arith.mulf %1, %304 : vector<4x256xf32>
    %c0_90 = arith.constant 0 : index
    %c0_91 = arith.constant 0 : index
    %c0_92 = arith.constant 0 : index
    %306 = vector.load %arg4[%c0_90, %c0_91, %c0_92] : memref<1x4x256xf32, #tpu.memory_space<vmem>>, vector<1x4x256xf32>
    %307 = vector.shape_cast %306 : vector<1x4x256xf32> to vector<4x256xf32>
    %308 = vector.shape_cast %305 : vector<4x256xf32> to vector<1x4x256xf32>
    tpu.vector_store %arg4[%c0_90, %c0_91, %c0_92], %308 {strides = array<i32>} : memref<1x4x256xf32, #tpu.memory_space<vmem>>, vector<1x4x256xf32>,
    return
  }
  func.func @transform_0(%arg0: i32) -> (i32, i32, i32) {
    %c0_i32 = arith.constant 0 : i32
    %c0_i32_0 = arith.constant 0 : i32
    %c0_i32_1 = arith.constant 0 : i32
    return %arg0, %c0_i32, %c0_i32_0 : i32, i32, i32
  }
  func.func @transform_1(%arg0: i32) -> (i32, i32) {
    %c0_i32 = arith.constant 0 : i32
    %c0_i32_0 = arith.constant 0 : i32
    %c0_i32_1 = arith.constant 0 : i32
    return %c0_i32, %c0_i32_0 : i32, i32
  }
  func.func @transform_2(%arg0: i32) -> (i32, i32) {
    %c0_i32 = arith.constant 0 : i32
    %c0_i32_0 = arith.constant 0 : i32
    %c0_i32_1 = arith.constant 0 : i32
    return %c0_i32, %c0_i32_0 : i32, i32
  }
  func.func @transform_3(%arg0: i32) -> (i32, i32, i32) {
    %c0_i32 = arith.constant 0 : i32
    %c0_i32_0 = arith.constant 0 : i32
    %c0_i32_1 = arith.constant 0 : i32
    return %arg0, %c0_i32, %c0_i32_0 : i32, i32, i32
  }
}

</mosaic_0001>

<bundles_post_ra>
// kernel: tpu_custom_call.1
= control target key start
LH: loop header
LB: loop body
LE: loop exit
PB: predicated region body
PF: predicated region fallthrough
CT: control target
= control target key end

     0   :  { %8 = vsyncpa [#allocation4], 0  ;;  %s3104_s0 = inlined_call_operand.hbm [shape: f32[2,4,256], index: 0, kind: input, shape index: {}]   ;;  %s3105_s1 = inlined_call_operand.hbm [shape: f32[2,49], index: 1, kind: input, shape index: {}]   ;;  %s3106_s2 = inlined_call_operand.hbm [shape: f32[7,256], index: 2, kind: input, shape index: {}]   ;;  %s3107_s3 = inlined_call_operand.hbm [shape: f32[2,4,256], index: 3, kind: output, shape index: {}]  }
   0x1   :  { %10 = vsyncpa [#allocation4 + $0x1], 0 }
   0x2   :  { %11 = vsyncpa [#allocation7], 0 }
   0x3   :  { %12 = vsyncpa [#allocation5], 0 }
   0x4   :  { %14 = vsyncpa [#allocation5 + $0x1], 0  ;;  %s2278_s12 = smov 0   ;;  %s2280_s13 = smov 0  }
   0x5   :  { %s2282_s14 = smov 0   ;;  %s2284_s15 = smov 0  }
   0x6 LB: > { %s2299_s16 = sadd.s32 4294967295, %s2155_s15   ;;  %s1751_s17 = sadd.s32 4294967294, %s2155_s15   ;;  %s2155_s15 = sphi %s2284_s15, %s3135_s15   ;;  %s2151_s14 = sphi %s2282_s14, %s3134_s14   ;;  %s2147_s13 = sphi %s2280_s13, %s3133_s13   ;;  %s2143_s12 = sphi %s2278_s12, %s3132_s12  }
   0x7   : > { %p40_p0 = scmp.ne.s32.totalorder %s2147_s13, %s2143_s12  ;;  %p41_p1 = scmp.eq.s32.totalorder %s2299_s16, 0 }
   0x8   : > { %p106_p2 = scmp.eq.s32.totalorder %s2299_s16, 1  ;;  %p112_p3 = scmp.eq.s32.totalorder %s1751_s17, 1 }
   0x9   : > { %p2308_p4 = por %p41_p1, %p40_p0  ;;  %p1752_p5 = scmp.ge.s32.totalorder %s2155_s15, 1 }
   0xa   : > { %p2313_p6 = por %p112_p3, %p40_p0  ;;  %p119_p7 = scmp.lt.s32.totalorder %s2155_s15, 3 }
   0xb   : > { %s131_s22 = sshll.u32 %s3105_s1, 4  ;;  %s2157_s24 = smov [#allocation6]   ;;  %s132_s22 = int_to_ptr.hbm [resolvable:$true] %s131_s22 }
   0xc   : > { %p2321_p8 = pnand %p1752_p5, %p119_p7  ;;  %s133_s25 = sshll.u32 %s2157_s24, 4  ;;  %s134_s25 = int_to_ptr.vmem [resolvable:$true] %s133_s25 }
   0xd   : > { %s143_s28 = sshll.u32 %s3106_s2, 4  ;;  %s2158_s29 = smov [#allocation8]   ;;  %s144_s28 = int_to_ptr.hbm [resolvable:$true] %s143_s28 }
   0xe   : > { %p1783_p10 = pneg %p2321_p8  ;;  %s145_s30 = sshll.u32 %s2158_s29, 4  ;;  %s146_s30 = int_to_ptr.vmem [resolvable:$true] %s145_s30 }
   0xf   : > { %s2334_s4 = sadd.s32 1, %s2155_s15   ;;  %s27_s5 = sadd.s32 1, %s2151_s14 }
  0x10   : > { %p1784_p11 = pnand %p1783_p10, %p41_p1  ;;  %s24_s6 = ssub.s32 %s2155_s15, %s2334_s4 }
  0x11   : > { %p34_p12 = scmp.ne.s32.totalorder %s2151_s14, %s2147_s13  ;;  %p25_p13 = scmp.eq.s32.totalorder %s24_s6, 0 }
  0x12   : > { %1786 = dma.hbm_to_vmem [thread:$0]  (!%p1784_p11), %s132_s22, 32, %s134_s25, [#allocation7]  }
  0x13   : > { %1789 = dma.hbm_to_vmem [thread:$0]  (!%p1784_p11), %s144_s28, 256, %s146_s30, [#allocation7]  }
  0x14   : > { %p35_p0 = scmp.eq.s32.totalorder %s2155_s15, 0  ;;  %p2344_p3 = por %p106_p2, %p34_p12 }
  0x15   : > { %p1800_p5 = scmp.lt.s32.totalorder %s2155_s15, 2  ;;  %s156_s9 = sand.u32 1, %s2151_s14  }
  0x16   : > { %s2350_s8 = scalar_select %p25_p13, %s2151_s14, %s27_s5  }
  0x17   : > { %p36_p7 = por %p35_p0, %p34_p12  ;;  %s1756_s10 = sshll.u32 %s156_s9, 3 }
  0x18   : > { %s1769_s11 = sshll.u32 %s2155_s15, 3  ;;  %s160_s22 = scalar_lea.vmem [#allocation3], %s1756_s10 }
  0x19   : > { %s165_s21 = scalar_lea.hbm %s3104_s0, %s1769_s11  ;;  %s169_s24 = sshll.u32 %s160_s22, 4  ;;  %s170_s24 = int_to_ptr.vmem [resolvable:$true] %s169_s24 }
  0x1a   : > { %s167_s25 = sshll.u32 %s165_s21, 4  ;;  %p2357_p2 = pnand %p1800_p5, %p36_p7  ;;  %s168_s25 = int_to_ptr.hbm [resolvable:$true] %s167_s25 }
  0x1b   : > { %s157_s27 = scalar_lea.sflag [#allocation4], %s156_s9  ;;  %s2055_s28 = sshra.s32 %s168_s25, 4  ;;  %s2056_s28 = int_to_ptr.hbm [resolvable:$true] %s2055_s28 }
  0x1c   : > { %s2057_s29 = scalar_lea.hbm %s2056_s28, 8  ;;  %p2059_p11 = pneg %p2357_p2 }
  0x1d   : > { %p2058_p10 = scmp.ne.s32.totalorder %s2056_s28, %s2057_s29  ;;  %s2062_s6 = scalar_lea.hbm %s3104_s0, 16 }
  0x1e   : > { %p2063_p0 = scmp.lt.s32.totalorder %s2056_s28, %s3104_s0  ;;  %p2064_p5 = scmp.lt.s32.totalorder %s2062_s6, %s2057_s29 }
  0x1f   : > { %p2060_p12 = pnand %p2059_p11, %p2058_p10 }
  0x20   : > { %p2065_p7 = por %p2064_p5, %p2063_p0 }
  0x21   : > { %p2061_p13 = pneg %p2060_p12 }
  0x23   : > { %p2066_p9 = pnand %p2065_p7, %p2061_p13 }
  0x25   : > { %2069 = shalt.err (!%p2066_p9)
}
  0x26   : > { %1793 = dma.hbm_to_vmem [thread:$0]  (!%p2357_p2), %s168_s25, 128, %s170_s24, %s157_s27  }
  0x27   : > { %178 = sbr.rel (%p2321_p8) target bundleno = 956 (0x3bc), region = 32 }
  0x2c   : > { %s2374_s9 = sand.u32 1, %s2147_s13  }
  0x2d   : > { %s1760_s17 = sshll.u32 %s2374_s9, 3  ;;  %s181_s20 = scalar_lea.sflag [#allocation4], %s2374_s9 }
  0x2e   : > { %s184_s21 = scalar_lea.vmem [#allocation3], %s1760_s17 }
  0x2f   : > { %2130 = dma.done.wait (%p2308_p4), %s181_s20, 128  }
  0x30   : > { %2132 = vsyncadd (%p2308_p4), %s181_s20, 4294967168 }
  0x31   : > { %2134 = dma.done.wait (%p41_p1), [#allocation7], 288  }
  0x32   : > { %2136 = vsyncadd (%p41_p1), [#allocation7], 4294967008  ;;  %v2159_v0 = vmov 28   ;;  %v2388_v1 = vld [vmem:[#allocation6] sm:$0x3]  ;;  %v2390_v2 = vld [vmem:[%s184_s21] sm:$0xff] }
  0x33   : > { %1941 = vset.pattern.permute.xlu0 %v2159_v0  ;;  %3119 = vst [vmem:[#allocation13_spill] sm:$0xff] %v2390_v2  ;;  %v2160_v3 = vmov 0   ;;  %v2161_v4 = vmov 21   ;;  %vm225_vm0 = vcmask 1043456   ;;  %v2162_v7 = vmov 42   ;;  %s2166_s18 = smov 51  }
  0x34   : > { %386 = vperm.xlu0 %1941, %v2388_v1   ;;  %220 = vst [vmem:[#allocation1] ss:$2 sm:$0xff] %v2390_v2  ;;  %1937 = vset.pattern.permute.xlu1 %v2160_v3  ;;  %v2163_v14 = vmov 35   ;;  %v2164_v27 = vmov 8   ;;  %v2165_v36 = vmov 1   ;;  %vm268_vm1 = vcmask 1040384  }
  0x35   : > { %1940 = vset.pattern.permute.xlu2 %v2161_v4  ;;  %296 = vperm.xlu1 %1937, %v2388_v1   ;;  %v2167_v46 = vmov 15   ;;  %v2168_v48 = vmov 29   ;;  %v2169_v49 = vmov 43   ;;  %v2170_v50 = vmov 22   ;;  %s2185_s23 = smov 112   ;;  %s2188_s22 = smov 96  }
  0x36   : > { %361 = vperm.xlu2 %1940, %v2388_v1   ;;  %v2171_v51 = vmov 36   ;;  %v2172_v52 = vmov 9   ;;  %v2173_v53 = vmov 2   ;;  %vm261_vm2 = vcmask 410624   ;;  %s2189_s24 = smov 80   ;;  %s2190_s25 = smov 64  }
  0x37   : > { %v2174_v54 = vmov 23   ;;  %v2175_v55 = vmov 16   ;;  %v2176_v56 = vmov 0.0   ;;  %vm263_vm3 = vcmask 828824   ;;  %s2191_s26 = smov 48   ;;  %s2193_s27 = smov 32  }
  0x38   : > { %262 = vst.msk [vmem:[#allocation2] sm:$0x3] %vm261_vm2, %v2176_v56  ;;  %v2177_v57 = vmov 37   ;;  %v2178_v58 = vmov 30   ;;  %v2179_v60 = vmov 7   ;;  %v2180_v61 = vmov 3  }
  0x39   : > { %264 = vst.msk [vmem:[#allocation2 + $0x4] sm:$0x3] %vm263_vm3, %v2176_v56  ;;  %v2181_v62 = vmov 44   ;;  %v276_v0 = vlaneseq  ;;  %v2182_v3 = vmov 17   ;;  %v2183_v4 = vmov 10   ;;  %s2195_s28 = smov 127  }
  0x3a   : > { %vm273_vm6 = vcmask 416768   ;;  %s2196_s29 = smov 95   ;;  %s2197_s30 = smov 111   ;;  %vm325_vm8 = vcmask 916480   ;;  %vm350_vm9 = vcmask 785408   ;;  %vm375_vm10 = vcmask 654336  }
  0x3b   : > { %v221_v5 = vld.sshfl [vmem:[#allocation1] sm:$0xff pattern:$0x75316420]  ;;  %v222_v6 = vld.sshfl [vmem:[#allocation1 + $0x8] sm:$0xff pattern:$0x75316420] }
  0x3c   : > { %1943 = vset.pattern.permute.xlu0 %v2162_v7  ;;  %v226_v8 = vsel %vm225_vm0, %v221_v5, 0.0  ;;  %v233_v9 = vsel %vm225_vm0, %v222_v6, 0.0  ;;  %242 = vst [vmem:[#allocation1] ss:$2 sm:$0xff] %v2390_v2  ;;  %v2184_v5 = vmov 14   ;;  %vm277_vm4 = vcmp.ge.s32.totalorder %v276_v0, 51 }
  0x3d   : > { %436 = vperm.xlu0 %1943, %v2388_v1   ;;  %v227_v10 = vrot.slane %v226_v8, 4  ;;  %v234_v11 = vrot.slane %v233_v9, 4  ;;  %1938 = vset.pattern.permute.xlu1 %v2179_v60  ;;  %vm278_vm5 = vcmp.lt.s32.totalorder %v276_v0, 307  ;;  %s2199_s5 = smov 63   ;;  %s2200_s6 = smov 79   ;;  %vm400_vm11 = vcmask 523264  }
  0x3e   : > { %1942 = vset.pattern.permute.xlu2 %v2163_v14  ;;  %311 = vperm.xlu1 %1938, %v2388_v1   ;;  %vm279_vm7 = vmand %vm277_vm4, %vm278_vm5  ;;  %s2202_s10 = smov 31   ;;  %s2203_s11 = smov 47   ;;  %vm425_vm12 = vcmask 392192   ;;  %vm510_vm13 = vcmask 908288   ;;  %vm485_vm14 = vcmask 1039360   ;;  %vm535_vm15 = vcmask 777216  }
  0x3f   : > { %v228_v12 = vadd.f32 %v227_v10, %v226_v8  ;;  %v235_v13 = vadd.f32 %v234_v11, %v233_v9  ;;  %411 = vperm.xlu2 %1942, %v2388_v1   ;;  %s2205_s20 = smov 110   ;;  %s2206_s21 = smov 126   ;;  %vm585_vm2 = vcmask 515072   ;;  %vm610_vm3 = vcmask 384000  }
  0x40   : > { %vm450_vm4 = vcmask 261120   ;;  %vm635_vm5 = vcmask 252928  }
  0x41   : > { %v229_v15 = vrot.slane %v228_v12, 2  ;;  %v236_v16 = vrot.slane %v235_v13, 2 }
  0x43   : > { %v230_v17 = vadd.f32 %v229_v15, %v228_v12  ;;  %v237_v18 = vadd.f32 %v236_v16, %v235_v13  ;;  %v243_v19 = vld.sshfl [vmem:[#allocation1] sm:$0xff pattern:$0x75316420]  ;;  %v244_v20 = vld.sshfl [vmem:[#allocation1 + $0x8] sm:$0xff pattern:$0x75316420] }
  0x44   : > { %v247_v21 = vsel %vm225_vm0, %v243_v19, -inf  ;;  %v254_v22 = vsel %vm225_vm0, %v244_v20, -inf }
  0x45   : > { %v231_v23 = vrot.slane %v230_v17, 1  ;;  %v238_v24 = vrot.slane %v237_v18, 1  ;;  %v248_v25 = vrot.slane %v247_v21, 4  ;;  %v255_v26 = vrot.slane %v254_v22, 4  ;;  %1945 = vset.pattern.permute.xlu0 %v2164_v27 }
  0x46   : > { %1939 = vset.pattern.permute.xlu1 %v2184_v5 }
  0x47   : > { %v232_v28 = vadd.f32 %v231_v23, %v230_v17  ;;  %v239_v29 = vadd.f32 %v238_v24, %v237_v18  ;;  %v249_v30 = vmax.f32 %v247_v21, %v248_v25  ;;  %v256_v31 = vmax.f32 %v254_v22, %v255_v26  ;;  %1944 = vset.pattern.permute.xlu2 %v2165_v36 }
  0x48   : > { %471 = vperm.xlu2 %1944, %v2388_v1   ;;  %336 = vperm.xlu1 %1939, %v2388_v1   ;;  %v2186_v23 = vmov 31   ;;  %v2187_v24 = vmov 24  }
  0x49   : > { %v240_v32 = vmul.f32 0.25, %v232_v28  ;;  %v241_v33 = vmul.f32 0.25, %v239_v29  ;;  %v250_v34 = vrot.slane %v249_v30, 2  ;;  %v257_v35 = vrot.slane %v256_v31, 2 }
  0x4b   : > { %v267_v37 = vrot.slane %v241_v33, 7  ;;  %v251_v38 = vmax.f32 %v249_v30, %v250_v34  ;;  %v258_v39 = vmax.f32 %v256_v31, %v257_v35 }
  0x4d   : > { %v269_v40 = vsel %vm268_vm1, %v240_v32, %v267_v37  ;;  %v252_v41 = vrot.slane %v251_v38, 1  ;;  %v259_v42 = vrot.slane %v258_v39, 1 }
  0x4e   : > { %270 = vrot.lane.b32.xlu0 %v269_v40, %s2166_s18 }
  0x4f   : > { %v253_v43 = vmax.f32 %v251_v38, %v252_v41  ;;  %v260_v44 = vmax.f32 %v258_v39, %v259_v42 }
  0x50   : > { %1946 = vset.pattern.permute.xlu2 %v2167_v46 }
  0x51   : > { %v283_v45 = vrot.slane %v260_v44, 7  ;;  %521 = vperm.xlu2 %1946, %v2388_v1  }
  0x53   : > { %v284_v47 = vsel %vm268_vm1, %v253_v43, %v283_v45  ;;  %vm560_vm1 = vcmask 646144  }
  0x56   : > { %285 = vrot.lane.b32.xlu0 %v284_v47, %s2166_s18  ;;  %s2208_s18 = smov 78  }
  0x59   : > { %1948 = vset.pattern.permute.xlu2 %v2168_v48 }
  0x5a   : > { %571 = vperm.xlu2 %1948, %v2388_v1  }
  0x5e   : > { %496 = vperm.xlu0 %1945, %v2388_v1  }
  0x62   : > { %1950 = vset.pattern.permute.xlu2 %v2169_v49 }
  0x63   : > { %621 = vperm.xlu2 %1950, %v2388_v1  }
  0x66   : > { %1947 = vset.pattern.permute.xlu0 %v2170_v50 }
  0x67   : > { %546 = vperm.xlu0 %1947, %v2388_v1  }
  0x6b   : > { %1952 = vset.pattern.permute.xlu2 %v2172_v52 }
  0x6c   : > { %682 = vperm.xlu2 %1952, %v2388_v1  }
  0x6f   : > { %1949 = vset.pattern.permute.xlu0 %v2171_v51  ;;  %v2192_v51 = vmov 45  }
  0x70   : > { %596 = vperm.xlu0 %1949, %v2388_v1  }
  0x74   : > { %1954 = vset.pattern.permute.xlu2 %v2174_v54 }
  0x75   : > { %732 = vperm.xlu2 %1954, %v2388_v1  }
  0x78   : > { %1951 = vset.pattern.permute.xlu0 %v2173_v53  ;;  %v2194_v53 = vmov 38  }
  0x79   : > { %657 = vperm.xlu0 %1951, %v2388_v1  }
  0x7d   : > { %1956 = vset.pattern.permute.xlu2 %v2177_v57 }
  0x7e   : > { %782 = vperm.xlu2 %1956, %v2388_v1  }
  0x81   : > { %1953 = vset.pattern.permute.xlu0 %v2175_v55 }
  0x82   : > { %707 = vperm.xlu0 %1953, %v2388_v1  }
  0x86   : > { %1958 = vset.pattern.permute.xlu2 %v2180_v61 }
  0x87   : > { %843 = vperm.xlu2 %1958, %v2388_v1  }
  0x8a   : > { %1955 = vset.pattern.permute.xlu0 %v2178_v58 }
  0x8b   : > { %757 = vperm.xlu0 %1955, %v2388_v1  }
  0x8f   : > { %1960 = vset.pattern.permute.xlu2 %v2182_v3 }
  0x90   : > { %893 = vperm.xlu2 %1960, %v2388_v1   ;;  %v2426_v12 = vpop.permute.xlu2 %361 }
  0x93   : > { %1957 = vset.pattern.permute.xlu0 %v2181_v62 }
  0x94   : > { %807 = vperm.xlu0 %1957, %v2388_v1  }
  0x98   : > { %1962 = vset.pattern.permute.xlu2 %v2186_v23 }
  0x99   : > { %v2428_v15 = vpop.permute.xlu2 %411 }
  0x9c   : > { %1959 = vset.pattern.permute.xlu0 %v2183_v4 }
  0x9d   : > { %868 = vperm.xlu0 %1959, %v2388_v1  }
  0xa2   : > { %v2434_v22 = vpop.permute.xlu2 %471 }
  0xa5   : > { %1961 = vset.pattern.permute.xlu0 %v2187_v24 }
  0xa6   : > { %v2416_v59 = vpop.permute.xlu0 %386 }
  0xab   : > { %v2436_v29 = vpop.permute.xlu2 %521 }
  0xaf   : > { %v2421_v63 = vpop.permute.xlu0 %436 }
  0xb4   : > { %v2438_v34 = vpop.permute.xlu2 %571 }
  0xbd   : > { %v2440_v39 = vpop.permute.xlu2 %621 }
  0xc0   : > { %v271_v6 = vpop.permute.xlu0 %270 }
  0xc1   : > { %v272_v7 = vrot.slane %v271_v6, 7 }
  0xc3   : > { %v274_v8 = vsel %vm273_vm6, %v272_v7, %v271_v6 }
  0xc4   : > { %280 = vst.msk [vmem:[#allocation2] ss:$2 sm:$0x7] %vm279_vm7, %v274_v8 }
  0xc6   : > { %v2445_v45 = vpop.permute.xlu2 %682 }
  0xc8   : > { %v286_v9 = vpop.permute.xlu0 %285 }
  0xc9   : > { %v287_v10 = vrot.slane %v286_v9, 7 }
  0xcb   : > { %v288_v11 = vsel %vm273_vm6, %v287_v10, %v286_v9  ;;  %vm671_vm6 = vcmask 1031168  }
  0xcc   : > { %291 = vst.msk [vmem:[#allocation2 + $0x1] ss:$2 sm:$0x7] %vm279_vm7, %v288_v11  ;;  %vm696_vm7 = vcmask 900096  }
  0xcf   : > { %v2450_v52 = vpop.permute.xlu2 %732 }
  0xd0   : > { %v2442_v40 = vpop.permute.xlu0 %496 }
  0xd3   : > { %v293_v13 = vld [vmem:[#allocation2] sm:$0xf] }
  0xd4   : > { %300 = vst [vmem:[#allocation1] ss:$4 sm:$0xff] %v293_v13  ;;  %v309_v14 = vld [vmem:[#allocation2] sm:$0x3f] }
  0xd5   : > { %v334_v21 = vld [vmem:[#allocation2] sm:$0x3f] }
  0xd6   : > { %v359_v28 = vld [vmem:[#allocation2] sm:$0x3f] }
  0xd7   : > { %v384_v33 = vld [vmem:[#allocation2] sm:$0x3f] }
  0xd8   : > { %v409_v38 = vld [vmem:[#allocation2] sm:$0x3f]  ;;  %v2454_v60 = vpop.permute.xlu2 %782 }
  0xd9   : > { %v434_v44 = vld [vmem:[#allocation2] sm:$0x3f]  ;;  %v2448_v48 = vpop.permute.xlu0 %546 }
  0xda   : > { %v469_v50 = vld [vmem:[#allocation2] sm:$0x3f] }
  0xdb   : > { %v2430_v16 = vld.sshfl [vmem:[#allocation1] sm:$0xff pattern:$0x73625140]  ;;  %v2432_v17 = vld.sshfl [vmem:[#allocation1 + $0x8] sm:$0xff pattern:$0x73625140] }
  0xdc   : > { %315 = vst [vmem:[#allocation1] ss:$4 sm:$0xff] %v309_v14  ;;  %v494_v57 = vld [vmem:[#allocation2] sm:$0x3f] }
  0xdd   : > { %v519_v3 = vld [vmem:[#allocation2] sm:$0x3f] }
  0xde   : > { %v544_v9 = vld [vmem:[#allocation2] sm:$0x3f] }
  0xe1   : > { %v2458_v5 = vpop.permute.xlu2 %843 }
  0xe2   : > { %v2452_v58 = vpop.permute.xlu0 %596 }
  0xe3   : > { %v318_v18 = vld.sshfl [vmem:[#allocation1 + $0x10] sm:$0xff pattern:$0x73625140]  ;;  %v316_v19 = vld.sshfl [vmem:[#allocation1] sm:$0xff pattern:$0x73625140] }
  0xe4   : > { %323 = vrot.lane.b32.xlu0 %v318_v18, %s2185_s23  ;;  %319 = vrot.lane.b32.xlu2 %v316_v19, %s2185_s23  ;;  %v317_v20 = vld.sshfl [vmem:[#allocation1 + $0x8] sm:$0xff pattern:$0x73625140] }
  0xe5   : > { %340 = vst [vmem:[#allocation1] ss:$4 sm:$0xff] %v334_v21  ;;  %v569_v19 = vld [vmem:[#allocation2] sm:$0x3f]  ;;  %v2198_v21 = vmov 4  }
  0xea   : > { %v2464_v14 = vpop.permute.xlu2 %893 }
  0xeb   : > { %v2456_v4 = vpop.permute.xlu0 %657  ;;  %3120 = vst [vmem:[#allocation14_spill] sm:$0xff] %v2464_v14 }
  0xec   : > { %321 = vrot.lane.b32.xlu2 %v317_v20, %s2185_s23  ;;  %v343_v25 = vld.sshfl [vmem:[#allocation1 + $0x10] sm:$0xff pattern:$0x73625140]  ;;  %v342_v26 = vld.sshfl [vmem:[#allocation1 + $0x8] sm:$0xff pattern:$0x73625140] }
  0xed   : > { %348 = vrot.lane.b32.xlu1 %v343_v25, %s2188_s22  ;;  %346 = vrot.lane.b32.xlu0 %v342_v26, %s2188_s22  ;;  %v341_v27 = vld.sshfl [vmem:[#allocation1] sm:$0xff pattern:$0x73625140]  ;;  %v594_v26 = vld [vmem:[#allocation2] sm:$0x3f]  ;;  %s2209_s23 = smov 94  }
  0xee   : > { %365 = vst [vmem:[#allocation1] ss:$4 sm:$0xff] %v359_v28 }
  0xf4   : > { %344 = vrot.lane.b32.xlu2 %v341_v27, %s2188_s22  ;;  %v2460_v10 = vpop.permute.xlu0 %707  ;;  %s2211_s22 = smov 46  }
  0xf5   : > { %v367_v30 = vld.sshfl [vmem:[#allocation1 + $0x8] sm:$0xff pattern:$0x73625140]  ;;  %v366_v31 = vld.sshfl [vmem:[#allocation1] sm:$0xff pattern:$0x73625140] }
  0xf6   : > { %371 = vrot.lane.b32.xlu1 %v367_v30, %s2189_s24  ;;  %369 = vrot.lane.b32.xlu0 %v366_v31, %s2189_s24  ;;  %v368_v32 = vld.sshfl [vmem:[#allocation1 + $0x10] sm:$0xff pattern:$0x73625140]  ;;  %v297_v30 = vpop.permute.xlu1 %296 }
  0xf7   : > { %390 = vst [vmem:[#allocation1] ss:$4 sm:$0xff] %v384_v33 }
  0xfc   : > { %373 = vrot.lane.b32.xlu2 %v368_v32, %s2189_s24  ;;  %s2212_s24 = smov 62  }
  0xfd   : > { %v2466_v20 = vpop.permute.xlu0 %757 }
  0xfe   : > { %v391_v35 = vld.sshfl [vmem:[#allocation1] sm:$0xff pattern:$0x73625140]  ;;  %v392_v36 = vld.sshfl [vmem:[#allocation1 + $0x8] sm:$0xff pattern:$0x73625140] }
  0xff   : > { %394 = vrot.lane.b32.xlu1 %v391_v35, %s2190_s25  ;;  %v393_v37 = vld.sshfl [vmem:[#allocation1 + $0x10] sm:$0xff pattern:$0x73625140] }
 0x100   : > { %415 = vst [vmem:[#allocation1] ss:$4 sm:$0xff] %v409_v38 }
 0x104   : > { %396 = vrot.lane.b32.xlu2 %v392_v36, %s2190_s25  ;;  %v619_v36 = vld [vmem:[#allocation2] sm:$0x3f] }
 0x106   : > { %v2469_v28 = vpop.permute.xlu0 %807 }
 0x107   : > { %398 = vrot.lane.b32.xlu1 %v393_v37, %s2190_s25  ;;  %v416_v41 = vld.sshfl [vmem:[#allocation1] sm:$0xff pattern:$0x73625140]  ;;  %v417_v42 = vld.sshfl [vmem:[#allocation1 + $0x8] sm:$0xff pattern:$0x73625140] }
 0x108   : > { %419 = vrot.lane.b32.xlu0 %v416_v41, %s2191_s26  ;;  %v418_v43 = vld.sshfl [vmem:[#allocation1 + $0x10] sm:$0xff pattern:$0x73625140]  ;;  %v2201_v37 = vmov 11   ;;  %v312_v41 = vpop.permute.xlu1 %311  ;;  %s2213_s25 = smov 125  }
 0x109   : > { %440 = vst [vmem:[#allocation1] ss:$4 sm:$0xff] %v434_v44 }
 0x10c   : > { %943 = vperm.xlu2 %1962, %v2388_v1  }
 0x10f   : > { %421 = vrot.lane.b32.xlu1 %v417_v42, %s2191_s26  ;;  %v2472_v38 = vpop.permute.xlu0 %868 }
 0x110   : > { %918 = vperm.xlu0 %1961, %v2388_v1   ;;  %v441_v46 = vld.sshfl [vmem:[#allocation1] sm:$0xff pattern:$0x73625140]  ;;  %v442_v47 = vld.sshfl [vmem:[#allocation1 + $0x8] sm:$0xff pattern:$0x73625140] }
 0x111   : > { %v443_v49 = vld.sshfl [vmem:[#allocation1 + $0x10] sm:$0xff pattern:$0x73625140]  ;;  %3121 = vst [vmem:[#allocation15_spill] sm:$0xff] %v2472_v38 }
 0x112   : > { %475 = vst [vmem:[#allocation1] ss:$4 sm:$0xff] %v469_v50 }
 0x114   : > { %423 = vrot.lane.b32.xlu2 %v418_v43, %s2191_s26  ;;  %s2214_s26 = smov 30  }
 0x115   : > { %1964 = vset.pattern.permute.xlu2 %v2192_v51 }
 0x117   : > { %444 = vrot.lane.b32.xlu1 %v441_v46, %s2193_s27 }
 0x118   : > { %1963 = vset.pattern.permute.xlu0 %v2194_v53 }
 0x119   : > { %v476_v54 = vld.sshfl [vmem:[#allocation1] sm:$0xff pattern:$0x73625140]  ;;  %v477_v55 = vld.sshfl [vmem:[#allocation1 + $0x8] sm:$0xff pattern:$0x73625140] }
 0x11a   : > { %v478_v56 = vld.sshfl [vmem:[#allocation1 + $0x10] sm:$0xff pattern:$0x73625140]  ;;  %479 = vrot.lane.b32.xlu0 %v476_v54, %s2195_s28 }
 0x11b   : > { %500 = vst [vmem:[#allocation1] ss:$4 sm:$0xff] %v494_v57 }
 0x11c   : > { %446 = vrot.lane.b32.xlu2 %v442_v47, %s2193_s27  ;;  %v655_v47 = vld [vmem:[#allocation2] sm:$0x3f] }
 0x11f   : > { %448 = vrot.lane.b32.xlu1 %v443_v49, %s2193_s27  ;;  %v337_v49 = vpop.permute.xlu1 %336  ;;  %s2217_s27 = smov 93  }
 0x122   : > { %v501_v61 = vld.sshfl [vmem:[#allocation1] sm:$0xff pattern:$0x73625140]  ;;  %v502_v62 = vld.sshfl [vmem:[#allocation1 + $0x8] sm:$0xff pattern:$0x73625140] }
 0x123   : > { %v503_v0 = vld.sshfl [vmem:[#allocation1 + $0x10] sm:$0xff pattern:$0x73625140] }
 0x124   : > { %483 = vrot.lane.b32.xlu2 %v478_v56, %s2195_s28  ;;  %525 = vst [vmem:[#allocation1] ss:$4 sm:$0xff] %v519_v3  ;;  %v680_v56 = vld [vmem:[#allocation2] sm:$0x3f] }
 0x127   : > { %481 = vrot.lane.b32.xlu1 %v477_v55, %s2195_s28  ;;  %s2218_s28 = smov 109  }
 0x12b   : > { %v526_v6 = vld.sshfl [vmem:[#allocation1] sm:$0xff pattern:$0x73625140]  ;;  %v527_v7 = vld.sshfl [vmem:[#allocation1 + $0x8] sm:$0xff pattern:$0x73625140] }
 0x12c   : > { %v528_v8 = vld.sshfl [vmem:[#allocation1 + $0x10] sm:$0xff pattern:$0x73625140]  ;;  %529 = vrot.lane.b32.xlu0 %v526_v6, %s2196_s29  ;;  %506 = vrot.lane.b32.xlu2 %v502_v62, %s2197_s30 }
 0x12d   : > { %550 = vst [vmem:[#allocation1] ss:$4 sm:$0xff] %v544_v9 }
 0x12f   : > { %504 = vrot.lane.b32.xlu1 %v501_v61, %s2197_s30 }
 0x134   : > { %968 = vperm.xlu0 %1963, %v2388_v1   ;;  %993 = vperm.xlu2 %1964, %v2388_v1   ;;  %v551_v11 = vld.sshfl [vmem:[#allocation1] sm:$0xff pattern:$0x73625140]  ;;  %v552_v13 = vld.sshfl [vmem:[#allocation1 + $0x8] sm:$0xff pattern:$0x73625140] }
 0x135   : > { %v553_v18 = vld.sshfl [vmem:[#allocation1 + $0x10] sm:$0xff pattern:$0x73625140] }
 0x136   : > { %575 = vst [vmem:[#allocation1] ss:$4 sm:$0xff] %v569_v19 }
 0x137   : > { %508 = vrot.lane.b32.xlu1 %v503_v0, %s2197_s30  ;;  %v306_v0 = vmul.f32 %v2432_v17, %v297_v30  ;;  %s2221_s30 = smov 77  }
 0x13c   : > { %533 = vrot.lane.b32.xlu2 %v528_v8, %s2196_s29  ;;  %1965 = vset.pattern.permute.xlu0 %v2198_v21  ;;  %v2204_v8 = vmov 18  }
 0x13d   : > { %v576_v23 = vld.sshfl [vmem:[#allocation1] sm:$0xff pattern:$0x73625140]  ;;  %v577_v24 = vld.sshfl [vmem:[#allocation1 + $0x8] sm:$0xff pattern:$0x73625140]  ;;  %1966 = vset.pattern.permute.xlu2 %v2201_v37 }
 0x13e   : > { %v578_v25 = vld.sshfl [vmem:[#allocation1 + $0x10] sm:$0xff pattern:$0x73625140]  ;;  %579 = vrot.lane.b32.xlu0 %v576_v23, %s2199_s5  ;;  %v320_v27 = vpop.permute.xlu2 %319  ;;  %v705_v23 = vld [vmem:[#allocation2] sm:$0x3f] }
 0x13f   : > { %600 = vst [vmem:[#allocation1] ss:$4 sm:$0xff] %v594_v26  ;;  %531 = vrot.lane.b32.xlu1 %v527_v7, %s2196_s29  ;;  %v305_v26 = vmul.f32 %v2430_v16, %v297_v30  ;;  %v730_v30 = vld [vmem:[#allocation2] sm:$0x3f]  ;;  %s2219_s29 = smov 61  }
 0x144   : > { %556 = vrot.lane.b32.xlu2 %v552_v13, %s2200_s6 }
 0x146   : > { %v601_v31 = vld.sshfl [vmem:[#allocation1] sm:$0xff pattern:$0x73625140]  ;;  %v602_v32 = vld.sshfl [vmem:[#allocation1 + $0x8] sm:$0xff pattern:$0x73625140]  ;;  %v322_v33 = vpop.permute.xlu2 %321 }
 0x147   : > { %554 = vrot.lane.b32.xlu1 %v551_v11, %s2200_s6  ;;  %v603_v35 = vld.sshfl [vmem:[#allocation1 + $0x10] sm:$0xff pattern:$0x73625140]  ;;  %v326_v9 = vsel %vm325_vm8, %v320_v27, %v322_v33 }
 0x148   : > { %625 = vst [vmem:[#allocation1] ss:$4 sm:$0xff] %v619_v36 }
 0x14c   : > { %583 = vrot.lane.b32.xlu2 %v578_v25, %s2199_s5  ;;  %v330_v25 = vmul.f32 %v326_v9, %v312_v41  ;;  %v780_v9 = vld [vmem:[#allocation2] sm:$0x3f] }
 0x14e   : > { %v345_v42 = vpop.permute.xlu2 %344 }
 0x14f   : > { %v626_v43 = vld.sshfl [vmem:[#allocation1] sm:$0xff pattern:$0x73625140]  ;;  %v2474_v44 = vld.sshfl [vmem:[#allocation1 + $0x8] sm:$0xff pattern:$0x73625140]  ;;  %558 = vrot.lane.b32.xlu1 %v553_v18, %s2200_s6 }
 0x150   : > { %v628_v46 = vld.sshfl [vmem:[#allocation1 + $0x10] sm:$0xff pattern:$0x73625140]  ;;  %629 = vrot.lane.b32.xlu0 %v626_v43, %s2202_s10  ;;  %s2224_s6 = smov 108  }
 0x151   : > { %661 = vst [vmem:[#allocation1] ss:$4 sm:$0xff] %v655_v47 }
 0x154   : > { %606 = vrot.lane.b32.xlu2 %v602_v32, %s2203_s11  ;;  %v332_v32 = vadd.f32 %v330_v25, %v305_v26  ;;  %v2210_v25 = vmov 32  }
 0x156   : > { %v2478_v50 = vpop.permute.xlu2 %373  ;;  %v324_v51 = vpop.permute.xlu0 %323 }
 0x157   : > { %581 = vrot.lane.b32.xlu1 %v577_v24, %s2199_s5  ;;  %v327_v57 = vsel %vm325_vm8, %v322_v33, %v324_v51  ;;  %s2223_s5 = smov 29   ;;  %vm721_vm8 = vcmask 769024  }
 0x158   : > { %v2481_v53 = vld.sshfl [vmem:[#allocation1] sm:$0xff pattern:$0x73625140]  ;;  %v663_v54 = vld.sshfl [vmem:[#allocation1 + $0x8] sm:$0xff pattern:$0x73625140]  ;;  %1029 = vperm.xlu0 %1965, %v2388_v1   ;;  %v331_v61 = vmul.f32 %v327_v57, %v312_v41 }
 0x159   : > { %v2484_v55 = vld.sshfl [vmem:[#allocation1 + $0x10] sm:$0xff pattern:$0x73625140] }
 0x15a   : > { %686 = vst [vmem:[#allocation1] ss:$4 sm:$0xff] %v680_v56  ;;  %v333_v18 = vadd.f32 %v331_v61, %v306_v0  ;;  %v755_v0 = vld [vmem:[#allocation2] sm:$0x3f] }
 0x15c   : > { %1054 = vperm.xlu2 %1966, %v2388_v1  }
 0x15e   : > { %v2487_v62 = vpop.permute.xlu2 %396 }
 0x15f   : > { %604 = vrot.lane.b32.xlu1 %v601_v31, %s2203_s11  ;;  %v349_v3 = vpop.permute.xlu1 %348  ;;  %v347_v6 = vpop.permute.xlu0 %346 }
 0x160   : > { %v352_v7 = vsel %vm350_vm9, %v347_v6, %v349_v3  ;;  %1967 = vset.pattern.permute.xlu0 %v2204_v8  ;;  %v351_v17 = vsel %vm350_vm9, %v345_v42, %v347_v6  ;;  %vm746_vm9 = vcmask 637952  }
 0x161   : > { %v687_v11 = vld.sshfl [vmem:[#allocation1] sm:$0xff pattern:$0x73625140]  ;;  %v2492_v13 = vld.sshfl [vmem:[#allocation1 + $0x8] sm:$0xff pattern:$0x73625140]  ;;  %v356_v19 = vmul.f32 %v352_v7, %v337_v49  ;;  %v355_v27 = vmul.f32 %v351_v17, %v337_v49 }
 0x162   : > { %v689_v21 = vld.sshfl [vmem:[#allocation1 + $0x10] sm:$0xff pattern:$0x73625140]  ;;  %690 = vrot.lane.b32.xlu0 %v687_v11, %s2205_s20  ;;  %v2207_v49 = vmov 25  }
 0x163   : > { %711 = vst [vmem:[#allocation1] ss:$4 sm:$0xff] %v705_v23  ;;  %v2496_v24 = vadd.f32 %v356_v19, %v333_v18  ;;  %v357_v43 = vadd.f32 %v355_v27, %v332_v32 }
 0x164   : > { %633 = vrot.lane.b32.xlu2 %v628_v46, %s2202_s10 }
 0x165   : > { %1968 = vset.pattern.permute.xlu2 %v2207_v49 }
 0x166   : > { %v2500_v31 = vpop.permute.xlu2 %943 }
 0x167   : > { %3122 = vst [vmem:[#allocation16_spill] sm:$0xff] %v2500_v31  ;;  %608 = vrot.lane.b32.xlu1 %v603_v35, %s2203_s11  ;;  %s2227_s11 = smov 76  }
 0x168   : > { %v2503_v33 = vpop.permute.xlu1 %371  ;;  %v370_v36 = vpop.permute.xlu0 %369 }
 0x169   : > { %v376_v37 = vsel %vm375_vm10, %v370_v36, %v2503_v33  ;;  %v805_v36 = vld [vmem:[#allocation2] sm:$0x3f] }
 0x16a   : > { %v2507_v42 = vld.sshfl [vmem:[#allocation1] sm:$0xff pattern:$0x73625140]  ;;  %v713_v41 = vld.sshfl [vmem:[#allocation1 + $0x8] sm:$0xff pattern:$0x73625140]  ;;  %v380_v46 = vmul.f32 %v376_v37, %v2426_v12 }
 0x16b   : > { %v2510_v16 = vld.sshfl [vmem:[#allocation1 + $0x10] sm:$0xff pattern:$0x73625140] }
 0x16c   : > { %736 = vst [vmem:[#allocation1] ss:$4 sm:$0xff] %v730_v30  ;;  %v382_v47 = vadd.f32 %v380_v46, %v357_v43  ;;  %667 = vrot.lane.b32.xlu2 %v663_v54, %s2206_s21 }
 0x16e   : > { %v2512_v35 = vpop.permute.xlu2 %423 }
 0x16f   : > { %631 = vrot.lane.b32.xlu1 %v2474_v44, %s2202_s10  ;;  %s2225_s10 = smov 45  }
 0x171   : > { %v395_v51 = vpop.permute.xlu1 %394 }
 0x172   : > { %v401_v7 = vsel %vm400_vm11, %v395_v51, %v2487_v62 }
 0x173   : > { %v737_v56 = vld.sshfl [vmem:[#allocation1] sm:$0xff pattern:$0x73625140]  ;;  %v2516_v57 = vld.sshfl [vmem:[#allocation1 + $0x8] sm:$0xff pattern:$0x73625140] }
 0x174   : > { %v739_v61 = vld.sshfl [vmem:[#allocation1 + $0x10] sm:$0xff pattern:$0x73625140]  ;;  %740 = vrot.lane.b32.xlu0 %v737_v56, %s2208_s18  ;;  %694 = vrot.lane.b32.xlu2 %v689_v21, %s2205_s20 }
 0x175   : > { %761 = vst [vmem:[#allocation1] ss:$4 sm:$0xff] %v755_v0  ;;  %v866_v0 = vld [vmem:[#allocation2] sm:$0x3f] }
 0x176   : > { %v2520_v54 = vpop.permute.xlu2 %446 }
 0x177   : > { %665 = vrot.lane.b32.xlu1 %v2481_v53, %s2206_s21  ;;  %v405_v53 = vmul.f32 %v401_v7, %v2416_v59 }
 0x179   : > { %v2523_v44 = vpop.permute.xlu1 %398  ;;  %v407_v23 = vadd.f32 %v405_v53, %v382_v47  ;;  %v841_v47 = vld [vmem:[#allocation2] sm:$0x3f] }
 0x17a   : > { %v420_v18 = vpop.permute.xlu0 %419 }
 0x17c   : > { %v2525_v3 = vld.sshfl [vmem:[#allocation1] sm:$0xff pattern:$0x73625140]  ;;  %v763_v6 = vld.sshfl [vmem:[#allocation1 + $0x8] sm:$0xff pattern:$0x73625140]  ;;  %1079 = vperm.xlu0 %1967, %v2388_v1   ;;  %717 = vrot.lane.b32.xlu2 %v713_v41, %s2209_s23 }
 0x17d   : > { %v2531_v8 = vld.sshfl [vmem:[#allocation1 + $0x10] sm:$0xff pattern:$0x73625140] }
 0x17e   : > { %786 = vst [vmem:[#allocation1] ss:$4 sm:$0xff] %v780_v9  ;;  %v2535_v11 = vpop.permute.xlu2 %483 }
 0x17f   : > { %669 = vrot.lane.b32.xlu1 %v2484_v55, %s2206_s21  ;;  %s2230_s21 = smov 44  }
 0x181   : > { %v2537_v19 = vpop.permute.xlu1 %421 }
 0x182   : > { %v426_v21 = vsel %vm425_vm12, %v420_v18, %v2537_v19  ;;  %v2572_v9 = vpop.permute.xlu0 %918  ;;  %v891_v18 = vld [vmem:[#allocation2] sm:$0x3f] }
 0x183   : > { %v430_v17 = vmul.f32 %v426_v21, %v2428_v15  ;;  %3124 = vst [vmem:[#allocation18_spill] sm:$0xff] %v2572_v9 }
 0x184   : > { %1104 = vperm.xlu2 %1968, %v2388_v1   ;;  %1969 = vset.pattern.permute.xlu0 %v2210_v25  ;;  %v2216_v25 = vmov 46  }
 0x185   : > { %v787_v26 = vld.sshfl [vmem:[#allocation1] sm:$0xff pattern:$0x73625140]  ;;  %v2543_v27 = vld.sshfl [vmem:[#allocation1 + $0x8] sm:$0xff pattern:$0x73625140]  ;;  %v2545_v55 = vadd.f32 %v430_v17, %v407_v23 }
 0x186   : > { %v789_v32 = vld.sshfl [vmem:[#allocation1 + $0x10] sm:$0xff pattern:$0x73625140]  ;;  %790 = vrot.lane.b32.xlu0 %v787_v26, %s2211_s22  ;;  %v2552_v41 = vpop.permute.xlu2 %506  ;;  %v2215_v23 = vmov 39  }
 0x187   : > { %811 = vst [vmem:[#allocation1] ss:$4 sm:$0xff] %v805_v36  ;;  %692 = vrot.lane.b32.xlu1 %v2492_v13, %s2205_s20  ;;  %s2228_s20 = smov 124  }
 0x189   : > { %v2550_v37 = vpop.permute.xlu1 %444 }
 0x18c   : > { %744 = vrot.lane.b32.xlu2 %v739_v61, %s2208_s18 }
 0x18d   : > { %1970 = vset.pattern.permute.xlu2 %v2215_v23 }
 0x18e   : > { %v2555_v43 = vld.sshfl [vmem:[#allocation1] sm:$0xff pattern:$0x73625140]  ;;  %v813_v46 = vld.sshfl [vmem:[#allocation1 + $0x8] sm:$0xff pattern:$0x73625140]  ;;  %v2563_v51 = vpop.permute.xlu2 %993 }
 0x18f   : > { %v2557_v30 = vld.sshfl [vmem:[#allocation1 + $0x10] sm:$0xff pattern:$0x73625140]  ;;  %715 = vrot.lane.b32.xlu1 %v2507_v42, %s2209_s23  ;;  %3123 = vst [vmem:[#allocation17_spill] sm:$0xff] %v2563_v51  ;;  %v941_v51 = vld [vmem:[#allocation2] sm:$0x3f] }
 0x190   : > { %847 = vst [vmem:[#allocation1] ss:$4 sm:$0xff] %v841_v47 }
 0x191   : > { %v2561_v49 = vpop.permute.xlu1 %448 }
 0x194   : > { %767 = vrot.lane.b32.xlu2 %v763_v6, %s2212_s24 }
 0x196   : > { %v534_v7 = vpop.permute.xlu2 %533 }
 0x197   : > { %v848_v13 = vld.sshfl [vmem:[#allocation1] sm:$0xff pattern:$0x73625140]  ;;  %v2566_v56 = vld.sshfl [vmem:[#allocation1 + $0x8] sm:$0xff pattern:$0x73625140]  ;;  %719 = vrot.lane.b32.xlu1 %v2510_v16, %s2209_s23 }
 0x198   : > { %v850_v61 = vld.sshfl [vmem:[#allocation1 + $0x10] sm:$0xff pattern:$0x73625140]  ;;  %851 = vrot.lane.b32.xlu0 %v848_v13, %s2213_s25  ;;  %v916_v13 = vld [vmem:[#allocation2] sm:$0x3f]  ;;  %s2233_s23 = smov 123  }
 0x199   : > { %872 = vst [vmem:[#allocation1] ss:$4 sm:$0xff] %v866_v0  ;;  %v482_v42 = vpop.permute.xlu1 %481 }
 0x19c   : > { %794 = vrot.lane.b32.xlu2 %v789_v32, %s2211_s22 }
 0x19e   : > { %v557_v17 = vpop.permute.xlu2 %556 }
 0x19f   : > { %742 = vrot.lane.b32.xlu1 %v2516_v57, %s2208_s18  ;;  %v480_v57 = vpop.permute.xlu0 %479  ;;  %s2231_s18 = smov 92  }
 0x1a0   : > { %v2576_v6 = vld.sshfl [vmem:[#allocation1] sm:$0xff pattern:$0x73625140]  ;;  %v874_v53 = vld.sshfl [vmem:[#allocation1 + $0x8] sm:$0xff pattern:$0x73625140]  ;;  %1129 = vperm.xlu0 %1969, %v2388_v1  }
 0x1a1   : > { %v2579_v16 = vld.sshfl [vmem:[#allocation1 + $0x10] sm:$0xff pattern:$0x73625140]  ;;  %v505_v21 = vpop.permute.xlu1 %504 }
 0x1a2   : > { %897 = vst [vmem:[#allocation1] ss:$4 sm:$0xff] %v891_v18 }
 0x1a4   : > { %817 = vrot.lane.b32.xlu2 %v813_v46, %s2214_s26  ;;  %v511_v46 = vsel %vm510_vm13, %v505_v21, %v2552_v41 }
 0x1a5   : > { %v515_v0 = vmul.f32 %v511_v46, %v2442_v40 }
 0x1a7   : > { %765 = vrot.lane.b32.xlu1 %v2525_v3, %s2212_s24  ;;  %v486_v3 = vsel %vm485_vm14, %v480_v57, %v482_v42  ;;  %v530_v18 = vpop.permute.xlu0 %529 }
 0x1a8   : > { %1971 = vset.pattern.permute.xlu0 %v2216_v25  ;;  %v490_v23 = vmul.f32 %v486_v3, %v2434_v22  ;;  %v584_v25 = vpop.permute.xlu2 %583 }
 0x1a9   : > { %v898_v26 = vld.sshfl [vmem:[#allocation1] sm:$0xff pattern:$0x73625140]  ;;  %v2584_v32 = vld.sshfl [vmem:[#allocation1 + $0x8] sm:$0xff pattern:$0x73625140]  ;;  %v509_v36 = vpop.permute.xlu1 %508 }
 0x1aa   : > { %v900_v47 = vld.sshfl [vmem:[#allocation1 + $0x10] sm:$0xff pattern:$0x73625140]  ;;  %901 = vrot.lane.b32.xlu0 %v898_v26, %s2217_s27  ;;  %v517_v57 = vadd.f32 %v515_v0, %v490_v23  ;;  %v512_v9 = vsel %vm510_vm13, %v2552_v41, %v509_v36  ;;  %vm857_vm13 = vcmask 1022976  }
 0x1ab   : > { %922 = vst [vmem:[#allocation1] ss:$4 sm:$0xff] %v916_v13  ;;  %v516_v41 = vmul.f32 %v512_v9, %v2442_v40 }
 0x1ac   : > { %1154 = vperm.xlu2 %1970, %v2388_v1  }
 0x1af   : > { %769 = vrot.lane.b32.xlu1 %v2531_v8, %s2212_s24  ;;  %s2236_s24 = smov 91  }
 0x1b0   : > { %v2611_v0 = vpop.permute.xlu2 %606 }
 0x1b1   : > { %v532_v26 = vpop.permute.xlu1 %531 }
 0x1b2   : > { %v2595_v13 = vld.sshfl [vmem:[#allocation1] sm:$0xff pattern:$0x73625140]  ;;  %v924_v2 = vld.sshfl [vmem:[#allocation1 + $0x8] sm:$0xff pattern:$0x73625140]  ;;  %v536_v21 = vsel %vm535_vm15, %v530_v18, %v532_v26 }
 0x1b3   : > { %v2598_v31 = vld.sshfl [vmem:[#allocation1 + $0x10] sm:$0xff pattern:$0x73625140]  ;;  %v540_v46 = vmul.f32 %v536_v21, %v2436_v29  ;;  %v537_v21 = vsel %vm535_vm15, %v532_v26, %v534_v7  ;;  %vm907_vm15 = vcmask 760832  }
 0x1b4   : > { %947 = vst [vmem:[#allocation1] ss:$4 sm:$0xff] %v941_v51  ;;  %855 = vrot.lane.b32.xlu2 %v850_v61, %s2213_s25  ;;  %v487_v61 = vsel %vm485_vm14, %v482_v42, %v2535_v11  ;;  %v541_v11 = vmul.f32 %v537_v21, %v2436_v29  ;;  %v991_v29 = vld [vmem:[#allocation2] sm:$0x3f]  ;;  %vm882_vm14 = vcmask 891904  }
 0x1b5   : > { %v542_v8 = vadd.f32 %v540_v46, %v517_v57  ;;  %v491_v57 = vmul.f32 %v487_v61, %v2434_v22  ;;  %v2621_v46 = vpop.permute.xlu0 %968 }
 0x1b7   : > { %792 = vrot.lane.b32.xlu1 %v2543_v27, %s2211_s22  ;;  %v966_v27 = vld [vmem:[#allocation2] sm:$0x3f]  ;;  %v518_v42 = vadd.f32 %v516_v41, %v491_v57  ;;  %s2234_s22 = smov 60  }
 0x1b8   : > { %v2636_v9 = vpop.permute.xlu2 %1054 }
 0x1b9   : > { %v555_v3 = vpop.permute.xlu1 %554  ;;  %v543_v26 = vadd.f32 %v541_v11, %v518_v42  ;;  %v1027_v11 = vld [vmem:[#allocation2] sm:$0x3f]  ;;  %v2653_v42 = vld [vmem:[#allocation6] sm:$0x3] }
 0x1ba   : > { %v561_v18 = vsel %vm560_vm1, %v555_v3, %v557_v17 }
 0x1bb   : > { %v2607_v14 = vld.sshfl [vmem:[#allocation1 + $0x8] sm:$0xff pattern:$0x73625140]  ;;  %v2609_v38 = vld.sshfl [vmem:[#allocation1 + $0x10] sm:$0xff pattern:$0x73625140]  ;;  %v565_v51 = vmul.f32 %v561_v18, %v2448_v48 }
 0x1bc   : > { %v948_v23 = vld.sshfl [vmem:[#allocation1] sm:$0xff pattern:$0x73625140]  ;;  %878 = vrot.lane.b32.xlu2 %v874_v53, %s2218_s28 }
 0x1bd   : > { %951 = vrot.lane.b32.xlu0 %v948_v23, %s2219_s29  ;;  %972 = vst [vmem:[#allocation1] ss:$4 sm:$0xff] %v966_v27  ;;  %v567_v36 = vadd.f32 %v565_v51, %v542_v8  ;;  %v2220_v8 = vmov 5  }
 0x1be   : > { %1972 = vset.pattern.permute.xlu2 %v2220_v8 }
 0x1bf   : > { %815 = vrot.lane.b32.xlu1 %v2555_v43, %s2214_s26 }
 0x1c1   : > { %v559_v7 = vpop.permute.xlu1 %558 }
 0x1c2   : > { %v562_v53 = vsel %vm560_vm1, %v557_v17, %v559_v7  ;;  %v377_v7 = vsel %vm375_vm10, %v2503_v33, %v2478_v50  ;;  %v427_v50 = vsel %vm425_vm12, %v2537_v19, %v2512_v35  ;;  %vm771_vm10 = vcmask 506880  }
 0x1c3   : > { %v566_v3 = vmul.f32 %v562_v53, %v2448_v48  ;;  %v580_v48 = vpop.permute.xlu0 %579  ;;  %v431_v35 = vmul.f32 %v427_v50, %v2428_v15  ;;  %vm821_vm12 = vcmask 244736   ;;  %vm932_vm1 = vcmask 629760  }
 0x1c4   : > { %v2628_v18 = vld.sshfl [vmem:[#allocation1] sm:$0xff pattern:$0x73625140]  ;;  %v2630_v40 = vld.sshfl [vmem:[#allocation1 + $0x8] sm:$0xff pattern:$0x73625140]  ;;  %905 = vrot.lane.b32.xlu2 %v900_v47, %s2217_s27 }
 0x1c5   : > { %v2633_v22 = vld.sshfl [vmem:[#allocation1 + $0x10] sm:$0xff pattern:$0x73625140]  ;;  %1179 = vperm.xlu0 %1971, %v2388_v1   ;;  %v568_v43 = vadd.f32 %v566_v3, %v543_v26 }
 0x1c6   : > { %997 = vst [vmem:[#allocation1] ss:$4 sm:$0xff] %v991_v29 }
 0x1c7   : > { %819 = vrot.lane.b32.xlu1 %v2557_v30, %s2214_s26  ;;  %v2222_v30 = vmov 12   ;;  %s2238_s26 = smov 59  }
 0x1c9   : > { %v582_v17 = vpop.permute.xlu1 %581 }
 0x1ca   : > { %v586_v51 = vsel %vm585_vm2, %v580_v48, %v582_v17  ;;  %v587_v61 = vsel %vm585_vm2, %v582_v17, %v584_v25  ;;  %v634_v25 = vpop.permute.xlu2 %633  ;;  %v381_v48 = vmul.f32 %v377_v7, %v2426_v12  ;;  %v452_v12 = vsel %vm450_vm4, %v2520_v54, %v2561_v49 }
 0x1cb   : > { %v590_v47 = vmul.f32 %v586_v51, %v2438_v34  ;;  %v591_v23 = vmul.f32 %v587_v61, %v2438_v34  ;;  %v459_v61 = vld [vmem:[#allocation8] ss:$8 sm:$0x3]  ;;  %vm957_vm2 = vcmask 498688  }
 0x1cc   : > { %928 = vrot.lane.b32.xlu2 %v924_v2, %s2221_s30  ;;  %v383_v51 = vadd.f32 %v381_v48, %v2496_v24  ;;  %v461_v24 = vperm.slane %v459_v61, 0  ;;  %v462_v49 = vperm.slane %v459_v61, 1  ;;  %v1127_v61 = vld [vmem:[#allocation2] sm:$0x3f] }
 0x1cd   : > { %v998_v1 = vld.sshfl [vmem:[#allocation1] sm:$0xff pattern:$0x73625140]  ;;  %v2643_v27 = vld.sshfl [vmem:[#allocation1 + $0x8] sm:$0xff pattern:$0x73625140]  ;;  %v592_v21 = vadd.f32 %v590_v47, %v567_v36  ;;  %v593_v41 = vadd.f32 %v591_v23, %v568_v43  ;;  %1973 = vset.pattern.permute.xlu0 %v2222_v30  ;;  %v456_v47 = vmul.f32 %v452_v12, %v2421_v63 }
 0x1ce   : > { %v2645_v57 = vld.sshfl [vmem:[#allocation1 + $0x10] sm:$0xff pattern:$0x73625140]  ;;  %1001 = vrot.lane.b32.xlu0 %v998_v1, %s2223_s5  ;;  %v1052_v43 = vld [vmem:[#allocation2] sm:$0x3f]  ;;  %v630_v1 = vpop.permute.xlu0 %629 }
 0x1cf   : > { %1033 = vst [vmem:[#allocation1] ss:$4 sm:$0xff] %v1027_v11  ;;  %853 = vrot.lane.b32.xlu1 %v2566_v56, %s2213_s25  ;;  %v402_v56 = vsel %vm400_vm11, %v2487_v62, %v2523_v44  ;;  %v451_v44 = vsel %vm450_vm4, %v2550_v37, %v2520_v54  ;;  %v1077_v37 = vld [vmem:[#allocation2] sm:$0x3f]  ;;  %vm796_vm11 = vcmask 375808   ;;  %s2237_s25 = smov 28  }
 0x1d0   : > { %v406_v8 = vmul.f32 %v402_v56, %v2416_v59  ;;  %vm1007_vm4 = vcmask 236544  }
 0x1d1   : > { %v605_v2 = vpop.permute.xlu1 %604 }
 0x1d2   : > { %v611_v34 = vsel %vm610_vm3, %v605_v2, %v2611_v0  ;;  %v2674_v33 = vpop.permute.xlu2 %667  ;;  %v408_v59 = vadd.f32 %v406_v8, %v383_v51 }
 0x1d3   : > { %v615_v36 = vmul.f32 %v611_v34, %v2452_v58 }
 0x1d4   : > { %1215 = vperm.xlu2 %1972, %v2653_v42  }
 0x1d5   : > { %v617_v53 = vadd.f32 %v615_v36, %v592_v21 }
 0x1d6   : > { %v2659_v26 = vld.sshfl [vmem:[#allocation1] sm:$0xff pattern:$0x73625140]  ;;  %v2661_v3 = vld.sshfl [vmem:[#allocation1 + $0x8] sm:$0xff pattern:$0x73625140] }
 0x1d7   : > { %v2666_v29 = vld.sshfl [vmem:[#allocation1 + $0x10] sm:$0xff pattern:$0x73625140]  ;;  %876 = vrot.lane.b32.xlu1 %v2576_v6, %s2218_s28 }
 0x1d8   : > { %1058 = vst [vmem:[#allocation1] ss:$4 sm:$0xff] %v1052_v43 }
 0x1d9   : > { %v609_v17 = vpop.permute.xlu1 %608 }
 0x1da   : > { %v612_v62 = vsel %vm610_vm3, %v2611_v0, %v609_v17  ;;  %v455_v0 = vmul.f32 %v451_v44, %v2421_v63  ;;  %vm982_vm3 = vcmask 367616  }
 0x1db   : > { %v616_v6 = vmul.f32 %v612_v62, %v2452_v58  ;;  %v433_v58 = vadd.f32 %v431_v35, %v408_v59  ;;  %v1102_v62 = vld [vmem:[#allocation2] sm:$0x3f] }
 0x1dc   : > { %955 = vrot.lane.b32.xlu2 %v2609_v38, %s2219_s29  ;;  %v645_v38 = vld [vmem:[#allocation8 + $0x1] ss:$8 sm:$0x3]  ;;  %v457_v21 = vadd.f32 %v455_v0, %v2545_v55 }
 0x1dd   : > { %v618_v19 = vadd.f32 %v616_v6, %v593_v41  ;;  %v458_v41 = vadd.f32 %v456_v47, %v433_v58  ;;  %v647_v2 = vperm.slane %v645_v38, 0  ;;  %v648_v34 = vperm.slane %v645_v38, 1 }
 0x1de   : > { %v465_v48 = vmul.f32 %v461_v24, %v457_v21  ;;  %v2226_v6 = vmov 26   ;;  %v2229_v47 = vmov 19  }
 0x1df   : > { %v1059_v23 = vld.sshfl [vmem:[#allocation1] sm:$0xff pattern:$0x73625140]  ;;  %v2690_v54 = vld.sshfl [vmem:[#allocation1 + $0x8] sm:$0xff pattern:$0x73625140]  ;;  %880 = vrot.lane.b32.xlu1 %v2579_v16, %s2218_s28  ;;  %v695_v16 = vpop.permute.xlu2 %694  ;;  %v466_v55 = vmul.f32 %v462_v49, %v458_v41  ;;  %1974 = vset.pattern.permute.xlu2 %v2229_v47 }
 0x1e0   : > { %v2694_v15 = vld.sshfl [vmem:[#allocation1 + $0x10] sm:$0xff pattern:$0x73625140]  ;;  %1062 = vrot.lane.b32.xlu0 %v1059_v23, %s2224_s6  ;;  %s2240_s28 = smov 27  }
 0x1e1   : > { %1083 = vst [vmem:[#allocation1] ss:$4 sm:$0xff] %v1077_v37  ;;  %v632_v63 = vpop.permute.xlu1 %631 }
 0x1e2   : > { %v636_v30 = vsel %vm635_vm5, %v630_v1, %v632_v63  ;;  %v637_v11 = vsel %vm635_vm5, %v632_v63, %v634_v25  ;;  %v1152_v1 = vld [vmem:[#allocation2] sm:$0x3f]  ;;  %vm1043_vm5 = vcmask 1014784  }
 0x1e3   : > { %v640_v36 = vmul.f32 %v636_v30, %v2440_v39  ;;  %v641_v7 = vmul.f32 %v637_v11, %v2440_v39 }
 0x1e4   : > { %978 = vrot.lane.b32.xlu2 %v2630_v40, %s2225_s10 }
 0x1e5   : > { %v642_v56 = vadd.f32 %v640_v36, %v617_v53  ;;  %v643_v43 = vadd.f32 %v641_v7, %v618_v19 }
 0x1e7   : > { %v651_v50 = vmul.f32 %v647_v2, %v642_v56  ;;  %v652_v17 = vmul.f32 %v648_v34, %v643_v43  ;;  %903 = vrot.lane.b32.xlu1 %v2584_v32, %s2217_s27  ;;  %v718_v12 = vpop.permute.xlu2 %717  ;;  %v2719_v32 = vpop.permute.xlu0 %1029  ;;  %s2239_s27 = smov 107  }
 0x1e8   : > { %1240 = vperm.xlu0 %1973, %v2653_v42   ;;  %v2707_v25 = vld.sshfl [vmem:[#allocation1] sm:$0xff pattern:$0x73625140]  ;;  %v2709_v8 = vld.sshfl [vmem:[#allocation1 + $0x8] sm:$0xff pattern:$0x73625140] }
 0x1e9   : > { %v2711_v39 = vld.sshfl [vmem:[#allocation1 + $0x10] sm:$0xff pattern:$0x73625140]  ;;  %v2713_v44 = vadd.f32 %v651_v50, %v465_v48  ;;  %v2715_v40 = vadd.f32 %v652_v17, %v466_v55  ;;  %v666_v53 = vpop.permute.xlu1 %665 }
 0x1ea   : > { %1108 = vst [vmem:[#allocation1] ss:$4 sm:$0xff] %v1102_v62  ;;  %v1213_v62 = vld [vmem:[#allocation2] sm:$0x3f] }
 0x1ec   : > { %1005 = vrot.lane.b32.xlu2 %v2645_v57, %s2223_s5 }
 0x1ef   : > { %926 = vrot.lane.b32.xlu1 %v2595_v13, %s2221_s30  ;;  %v2730_v57 = vpop.permute.xlu2 %1104  ;;  %v672_v13 = vsel %vm671_vm6, %v666_v53, %v2674_v33  ;;  %v691_v37 = vpop.permute.xlu0 %690 }
 0x1f0   : > { %1975 = vset.pattern.permute.xlu0 %v2226_v6 }
 0x1f1   : > { %v1109_v51 = vld.sshfl [vmem:[#allocation1] sm:$0xff pattern:$0x73625140]  ;;  %v2723_v35 = vld.sshfl [vmem:[#allocation1 + $0x8] sm:$0xff pattern:$0x73625140]  ;;  %v670_v19 = vpop.permute.xlu1 %669 }
 0x1f2   : > { %v2725_v59 = vld.sshfl [vmem:[#allocation1 + $0x10] sm:$0xff pattern:$0x73625140]  ;;  %1112 = vrot.lane.b32.xlu0 %v1109_v51, %s2227_s11  ;;  %v673_v0 = vsel %vm671_vm6, %v2674_v33, %v670_v19  ;;  %vm1068_vm6 = vcmask 883712  }
 0x1f3   : > { %1133 = vst [vmem:[#allocation1] ss:$4 sm:$0xff] %v1127_v61  ;;  %v677_v63 = vmul.f32 %v673_v0, %v2456_v4  ;;  %v2232_v61 = vmov 40  }
 0x1f4   : > { %1039 = vrot.lane.b32.xlu2 %v2661_v3, %s2228_s20 }
 0x1f7   : > { %930 = vrot.lane.b32.xlu1 %v2598_v31, %s2221_s30  ;;  %v676_v31 = vmul.f32 %v672_v13, %v2456_v4  ;;  %v745_v11 = vpop.permute.xlu2 %744  ;;  %s2245_s30 = smov 106  }
 0x1f9   : > { %v693_v23 = vpop.permute.xlu1 %692 }
 0x1fa   : > { %v2736_v58 = vld.sshfl [vmem:[#allocation1] sm:$0xff pattern:$0x73625140]  ;;  %v2738_v38 = vld.sshfl [vmem:[#allocation1 + $0x8] sm:$0xff pattern:$0x73625140]  ;;  %v697_v3 = vsel %vm696_vm7, %v691_v37, %v693_v23  ;;  %v698_v24 = vsel %vm696_vm7, %v693_v23, %v695_v16 }
 0x1fb   : > { %v2740_v49 = vld.sshfl [vmem:[#allocation1 + $0x10] sm:$0xff pattern:$0x73625140]  ;;  %v701_v21 = vmul.f32 %v697_v3, %v2445_v45  ;;  %v702_v33 = vmul.f32 %v698_v24, %v2445_v45  ;;  %v1177_v45 = vld [vmem:[#allocation2] sm:$0x3f]  ;;  %v2235_v24 = vmov 33  }
 0x1fc   : > { %1158 = vst [vmem:[#allocation1] ss:$4 sm:$0xff] %v1152_v1  ;;  %1265 = vperm.xlu2 %1974, %v2653_v42   ;;  %v1238_v23 = vld [vmem:[#allocation2] sm:$0x3f]  ;;  %vm1093_vm7 = vcmask 752640  }
 0x1fd   : > { %v703_v41 = vadd.f32 %v701_v21, %v676_v31  ;;  %v704_v30 = vadd.f32 %v702_v33, %v677_v63 }
 0x1ff   : > { %953 = vrot.lane.b32.xlu1 %v2607_v14, %s2219_s29  ;;  %v768_v48 = vpop.permute.xlu2 %767  ;;  %s2242_s29 = smov 122  }
 0x201   : > { %v716_v16 = vpop.permute.xlu1 %715 }
 0x202   : > { %v722_v2 = vsel %vm721_vm8, %v716_v16, %v718_v12 }
 0x203   : > { %v1159_v34 = vld.sshfl [vmem:[#allocation1] sm:$0xff pattern:$0x73625140]  ;;  %v2750_v36 = vld.sshfl [vmem:[#allocation1 + $0x8] sm:$0xff pattern:$0x73625140]  ;;  %v726_v4 = vmul.f32 %v722_v2, %v2460_v10 }
 0x204   : > { %v2753_v7 = vld.sshfl [vmem:[#allocation1 + $0x10] sm:$0xff pattern:$0x73625140]  ;;  %1162 = vrot.lane.b32.xlu0 %v1159_v34, %s2230_s21  ;;  %1066 = vrot.lane.b32.xlu2 %v2694_v15, %s2224_s6 }
 0x205   : > { %1183 = vst [vmem:[#allocation1] ss:$4 sm:$0xff] %v1177_v45  ;;  %v728_v14 = vadd.f32 %v726_v4, %v703_v41  ;;  %1976 = vset.pattern.permute.xlu2 %v2235_v24 }
 0x207   : > { %976 = vrot.lane.b32.xlu1 %v2628_v18, %s2225_s10  ;;  %v795_v0 = vpop.permute.xlu2 %794 }
 0x209   : > { %v720_v56 = vpop.permute.xlu1 %719 }
 0x20a   : > { %v723_v43 = vsel %vm721_vm8, %v718_v12, %v720_v56  ;;  %vm1118_vm8 = vcmask 621568  }
 0x20b   : > { %v727_v55 = vmul.f32 %v723_v43, %v2460_v10  ;;  %v741_v10 = vpop.permute.xlu0 %740 }
 0x20c   : > { %1290 = vperm.xlu0 %1975, %v2653_v42   ;;  %v2763_v50 = vld.sshfl [vmem:[#allocation1] sm:$0xff pattern:$0x73625140]  ;;  %v2765_v17 = vld.sshfl [vmem:[#allocation1 + $0x8] sm:$0xff pattern:$0x73625140]  ;;  %1089 = vrot.lane.b32.xlu2 %v2709_v8, %s2231_s18 }
 0x20d   : > { %v2769_v15 = vld.sshfl [vmem:[#allocation1 + $0x10] sm:$0xff pattern:$0x73625140]  ;;  %v729_v18 = vadd.f32 %v727_v55, %v704_v30 }
 0x20e   : > { %1219 = vst [vmem:[#allocation1] ss:$4 sm:$0xff] %v1213_v62 }
 0x20f   : > { %980 = vrot.lane.b32.xlu1 %v2633_v22, %s2225_s10  ;;  %v818_v63 = vpop.permute.xlu2 %817  ;;  %s2248_s10 = smov 74  }
 0x211   : > { %v743_v53 = vpop.permute.xlu1 %742 }
 0x212   : > { %v747_v12 = vsel %vm746_vm9, %v741_v10, %v743_v53  ;;  %v748_v6 = vsel %vm746_vm9, %v743_v53, %v745_v11  ;;  %vm1143_vm9 = vcmask 490496  }
 0x213   : > { %v751_v51 = vmul.f32 %v747_v12, %v2450_v52  ;;  %v752_v19 = vmul.f32 %v748_v6, %v2450_v52  ;;  %v2796_v41 = vpop.permute.xlu0 %1079 }
 0x214   : > { %1977 = vset.pattern.permute.xlu0 %v2232_v61  ;;  %1116 = vrot.lane.b32.xlu2 %v2725_v59, %s2227_s11 }
 0x215   : > { %v1220_v8 = vld.sshfl [vmem:[#allocation1] sm:$0xff pattern:$0x73625140]  ;;  %v2777_v13 = vld.sshfl [vmem:[#allocation1 + $0x8] sm:$0xff pattern:$0x73625140]  ;;  %v753_v47 = vadd.f32 %v751_v51, %v728_v14  ;;  %v754_v22 = vadd.f32 %v752_v19, %v729_v18 }
 0x216   : > { %v2779_v37 = vld.sshfl [vmem:[#allocation1 + $0x10] sm:$0xff pattern:$0x73625140]  ;;  %1223 = vrot.lane.b32.xlu0 %v1220_v8, %s2233_s23 }
 0x217   : > { %1244 = vst [vmem:[#allocation1] ss:$4 sm:$0xff] %v1238_v23  ;;  %1003 = vrot.lane.b32.xlu1 %v2643_v27, %s2223_s5  ;;  %v1263_v27 = vld [vmem:[#allocation2] sm:$0x3f]  ;;  %v2808_v45 = vpop.permute.xlu2 %1154  ;;  %s2246_s5 = smov 75  }
 0x219   : > { %v766_v52 = vpop.permute.xlu1 %765 }
 0x21a   : > { %v772_v59 = vsel %vm771_vm10, %v766_v52, %v768_v48 }
 0x21b   : > { %v776_v3 = vmul.f32 %v772_v59, %v2466_v20  ;;  %v791_v14 = vpop.permute.xlu0 %790 }
 0x21c   : > { %1139 = vrot.lane.b32.xlu2 %v2738_v38, %s2234_s22 }
 0x21d   : > { %v778_v33 = vadd.f32 %v776_v3, %v753_v47 }
 0x21e   : > { %v2788_v1 = vld.sshfl [vmem:[#allocation1] sm:$0xff pattern:$0x73625140]  ;;  %v2790_v31 = vld.sshfl [vmem:[#allocation1 + $0x8] sm:$0xff pattern:$0x73625140] }
 0x21f   : > { %v2792_v21 = vld.sshfl [vmem:[#allocation1 + $0x10] sm:$0xff pattern:$0x73625140]  ;;  %1037 = vrot.lane.b32.xlu1 %v2659_v26, %s2228_s20  ;;  %v1288_v26 = vld [vmem:[#allocation2] sm:$0x3f]  ;;  %v856_v12 = vpop.permute.xlu2 %855 }
 0x220   : > { %1269 = vst [vmem:[#allocation1] ss:$4 sm:$0xff] %v1263_v27 }
 0x221   : > { %v770_v38 = vpop.permute.xlu1 %769 }
 0x222   : > { %v773_v30 = vsel %vm771_vm10, %v768_v48, %v770_v38  ;;  %vm1168_vm10 = vcmask 359424  }
 0x223   : > { %v777_v11 = vmul.f32 %v773_v30, %v2466_v20 }
 0x224   : > { %1315 = vperm.xlu2 %1976, %v2653_v42  }
 0x225   : > { %v779_v34 = vadd.f32 %v777_v11, %v754_v22  ;;  %v1338_v22 = vld [vmem:[#allocation2] sm:$0x3f] }
 0x227   : > { %v1270_v16 = vld.sshfl [vmem:[#allocation1] sm:$0xff pattern:$0x73625140]  ;;  %v2801_v2 = vld.sshfl [vmem:[#allocation1 + $0x8] sm:$0xff pattern:$0x73625140]  ;;  %1041 = vrot.lane.b32.xlu1 %v2666_v29, %s2228_s20  ;;  %v879_v23 = vpop.permute.xlu2 %878 }
 0x228   : > { %v2805_v4 = vld.sshfl [vmem:[#allocation1 + $0x10] sm:$0xff pattern:$0x73625140]  ;;  %1273 = vrot.lane.b32.xlu0 %v1270_v16, %s2236_s24  ;;  %s2250_s20 = smov 42  }
 0x229   : > { %1294 = vst [vmem:[#allocation1] ss:$4 sm:$0xff] %v1288_v26  ;;  %v793_v56 = vpop.permute.xlu1 %792 }
 0x22a   : > { %v797_v20 = vsel %vm796_vm11, %v791_v14, %v793_v56  ;;  %v798_v43 = vsel %vm796_vm11, %v793_v56, %v795_v0  ;;  %vm1193_vm11 = vcmask 228352  }
 0x22b   : > { %v801_v48 = vmul.f32 %v797_v20, %v2454_v60  ;;  %v802_v29 = vmul.f32 %v798_v43, %v2454_v60  ;;  %v831_v60 = vld [vmem:[#allocation8 + $0x2] ss:$8 sm:$0x3]  ;;  %v2241_v43 = vmov 47  }
 0x22c   : > { %1166 = vrot.lane.b32.xlu2 %v2753_v7, %s2230_s21  ;;  %v1313_v7 = vld [vmem:[#allocation2] sm:$0x3f]  ;;  %v833_v51 = vperm.slane %v831_v60, 0  ;;  %v834_v3 = vperm.slane %v831_v60, 1 }
 0x22d   : > { %v803_v18 = vadd.f32 %v801_v48, %v778_v33  ;;  %v804_v10 = vadd.f32 %v802_v29, %v779_v34  ;;  %1978 = vset.pattern.permute.xlu2 %v2241_v43  ;;  %v3125_v29 = vld [vmem:[#allocation15_spill] sm:$0xff]  ;;  %v1474_v43 = vld [vmem:[#allocation2] sm:$0x3f] }
 0x22f   : > { %1064 = vrot.lane.b32.xlu1 %v2690_v54, %s2224_s6  ;;  %v906_v34 = vpop.permute.xlu2 %905  ;;  %s2247_s6 = smov 90  }
 0x230   : > { %1340 = vperm.xlu0 %1977, %v2653_v42   ;;  %v2817_v55 = vld.sshfl [vmem:[#allocation1] sm:$0xff pattern:$0x73625140]  ;;  %v2819_v62 = vld.sshfl [vmem:[#allocation1 + $0x8] sm:$0xff pattern:$0x73625140] }
 0x231   : > { %v2821_v53 = vld.sshfl [vmem:[#allocation1 + $0x10] sm:$0xff pattern:$0x73625140]  ;;  %v816_v54 = vpop.permute.xlu1 %815 }
 0x232   : > { %1319 = vst [vmem:[#allocation1] ss:$4 sm:$0xff] %v1313_v7  ;;  %v822_v6 = vsel %vm821_vm12, %v816_v54, %v818_v63 }
 0x233   : > { %v826_v19 = vmul.f32 %v822_v6, %v2469_v28  ;;  %v1424_v6 = vld [vmem:[#allocation2] sm:$0x3f] }
 0x234   : > { %1189 = vrot.lane.b32.xlu2 %v2765_v17, %s2237_s25 }
 0x235   : > { %v828_v0 = vadd.f32 %v826_v19, %v803_v18 }
 0x237   : > { %1087 = vrot.lane.b32.xlu1 %v2707_v25, %s2231_s18  ;;  %v837_v17 = vmul.f32 %v833_v51, %v828_v0  ;;  %v929_v18 = vpop.permute.xlu2 %928  ;;  %v2243_v0 = vmov 13  }
 0x239   : > { %v1320_v61 = vld.sshfl [vmem:[#allocation1] sm:$0xff pattern:$0x73625140]  ;;  %v2829_v8 = vld.sshfl [vmem:[#allocation1 + $0x8] sm:$0xff pattern:$0x73625140]  ;;  %v2837_v52 = vadd.f32 %v837_v17, %v2713_v44  ;;  %v820_v25 = vpop.permute.xlu1 %819  ;;  %v852_v44 = vpop.permute.xlu0 %851 }
 0x23a   : > { %v2831_v47 = vld.sshfl [vmem:[#allocation1 + $0x10] sm:$0xff pattern:$0x73625140]  ;;  %1323 = vrot.lane.b32.xlu0 %v1320_v61, %s2238_s26  ;;  %v823_v59 = vsel %vm821_vm12, %v818_v63, %v820_v25  ;;  %v1449_v25 = vld [vmem:[#allocation2] sm:$0x3f]  ;;  %vm1229_vm12 = vcmask 1006592  }
 0x23b   : > { %1344 = vst [vmem:[#allocation1] ss:$4 sm:$0xff] %v1338_v22  ;;  %v827_v24 = vmul.f32 %v823_v59, %v2469_v28 }
 0x23c   : > { %1227 = vrot.lane.b32.xlu2 %v2779_v37, %s2233_s23  ;;  %v1363_v37 = vld [vmem:[#allocation2] sm:$0x3f] }
 0x23d   : > { %v829_v27 = vadd.f32 %v827_v24, %v804_v10 }
 0x23f   : > { %1091 = vrot.lane.b32.xlu1 %v2711_v39, %s2231_s18  ;;  %v838_v11 = vmul.f32 %v834_v3, %v829_v27  ;;  %v2878_v17 = vpop.permute.xlu2 %1215  ;;  %s2255_s18 = smov 26  }
 0x241   : > { %v2852_v28 = vadd.f32 %v838_v11, %v2715_v40  ;;  %v854_v39 = vpop.permute.xlu1 %853  ;;  %v2867_v7 = vpop.permute.xlu0 %1129  ;;  %v3126_v11 = vld [vmem:[#allocation14_spill] sm:$0xff] }
 0x242   : > { %v2843_v33 = vld.sshfl [vmem:[#allocation1] sm:$0xff pattern:$0x73625140]  ;;  %v2845_v38 = vld.sshfl [vmem:[#allocation1 + $0x8] sm:$0xff pattern:$0x73625140]  ;;  %v858_v63 = vsel %vm857_vm13, %v852_v44, %v854_v39  ;;  %v859_v16 = vsel %vm857_vm13, %v854_v39, %v856_v12 }
 0x243   : > { %v2847_v30 = vld.sshfl [vmem:[#allocation1 + $0x10] sm:$0xff pattern:$0x73625140]  ;;  %v862_v48 = vmul.f32 %v858_v63, %v2458_v5  ;;  %vm1254_vm13 = vcmask 875520  }
 0x244   : > { %1369 = vst [vmem:[#allocation1] ss:$4 sm:$0xff] %v1363_v37  ;;  %1250 = vrot.lane.b32.xlu2 %v2790_v31, %s2239_s27  ;;  %v1399_v31 = vld [vmem:[#allocation2] sm:$0x3f]  ;;  %v2244_v37 = vmov 34  }
 0x245   : > { %1983 = vset.pattern.permute.xlu0 %v2244_v37 }
 0x247   : > { %1114 = vrot.lane.b32.xlu1 %v2723_v35, %s2227_s11  ;;  %s2249_s11 = smov 43  }
 0x249   : > { %v877_v40 = vpop.permute.xlu1 %876 }
 0x24a   : > { %v883_v20 = vsel %vm882_vm14, %v877_v40, %v879_v23 }
 0x24b   : > { %v1370_v26 = vld.sshfl [vmem:[#allocation1] sm:$0xff pattern:$0x73625140]  ;;  %v2856_v14 = vld.sshfl [vmem:[#allocation1 + $0x8] sm:$0xff pattern:$0x73625140]  ;;  %v887_v35 = vmul.f32 %v883_v20, %v3125_v29 }
 0x24c   : > { %1373 = vrot.lane.b32.xlu0 %v1370_v26, %s2240_s28  ;;  %v2859_v56 = vld.sshfl [vmem:[#allocation1 + $0x10] sm:$0xff pattern:$0x73625140]  ;;  %1365 = vperm.xlu2 %1978, %v2653_v42   ;;  %v956_v26 = vpop.permute.xlu2 %955 }
 0x24d   : > { %1405 = vst [vmem:[#allocation1] ss:$4 sm:$0xff] %v1399_v31  ;;  %v889_v10 = vadd.f32 %v887_v35, %v862_v48  ;;  %v3127_v48 = vld [vmem:[#allocation18_spill] sm:$0xff] }
 0x24f   : > { %1137 = vrot.lane.b32.xlu1 %v2736_v58, %s2234_s22  ;;  %v863_v58 = vmul.f32 %v859_v16, %v2458_v5  ;;  %v902_v5 = vpop.permute.xlu0 %901 }
 0x251   : > { %v881_v51 = vpop.permute.xlu1 %880 }
 0x252   : > { %v884_v19 = vsel %vm882_vm14, %v879_v23, %v881_v51  ;;  %vm1279_vm14 = vcmask 744448  }
 0x253   : > { %v888_v61 = vmul.f32 %v884_v19, %v3125_v29  ;;  %v1499_v19 = vld [vmem:[#allocation2] sm:$0x3f] }
 0x254   : > { %v1407_v12 = vld.sshfl [vmem:[#allocation1 + $0x8] sm:$0xff pattern:$0x73625140]  ;;  %v1406_v60 = vld.sshfl [vmem:[#allocation1] sm:$0xff pattern:$0x73625140]  ;;  %1980 = vset.pattern.permute.xlu2 %v2243_v0 }
 0x255   : > { %1411 = vrot.lane.b32.xlu0 %v1407_v12, %s2242_s29  ;;  %v2870_v54 = vld.sshfl [vmem:[#allocation1 + $0x10] sm:$0xff pattern:$0x73625140]  ;;  %1426 = vperm.xlu2 %1980, %v2653_v42   ;;  %v890_v22 = vadd.f32 %v888_v61, %v863_v58  ;;  %v979_v12 = vpop.permute.xlu2 %978 }
 0x256   : > { %1430 = vst [vmem:[#allocation1] ss:$4 sm:$0xff] %v1424_v6 }
 0x257   : > { %1141 = vrot.lane.b32.xlu1 %v2740_v49, %s2234_s22  ;;  %v952_v58 = vpop.permute.xlu0 %951 }
 0x259   : > { %v904_v23 = vpop.permute.xlu1 %903 }
 0x25a   : > { %v908_v49 = vsel %vm907_vm15, %v902_v5, %v904_v23  ;;  %v909_v27 = vsel %vm907_vm15, %v904_v23, %v906_v34  ;;  %vm1304_vm15 = vcmask 613376  }
 0x25b   : > { %v912_v44 = vmul.f32 %v908_v49, %v3126_v11  ;;  %v913_v39 = vmul.f32 %v909_v27, %v3126_v11  ;;  %v1524_v49 = vld [vmem:[#allocation2] sm:$0x3f] }
 0x25d   : > { %1409 = vrot.lane.b32.xlu0 %v1406_v60, %s2242_s29  ;;  %v1433_v59 = vld.sshfl [vmem:[#allocation1 + $0x10] sm:$0xff pattern:$0x73625140]  ;;  %v2881_v3 = vld.sshfl [vmem:[#allocation1] sm:$0xff pattern:$0x73625140]  ;;  %1277 = vrot.lane.b32.xlu2 %v2805_v4, %s2236_s24  ;;  %v914_v63 = vadd.f32 %v912_v44, %v889_v10  ;;  %v915_v16 = vadd.f32 %v913_v39, %v890_v22  ;;  %v1006_v23 = vpop.permute.xlu2 %1005 }
 0x25e   : > { %v2883_v24 = vld.sshfl [vmem:[#allocation1 + $0x8] sm:$0xff pattern:$0x73625140]  ;;  %v3128_v22 = vld [vmem:[#allocation16_spill] sm:$0xff] }
 0x25f   : > { %1455 = vst [vmem:[#allocation1] ss:$4 sm:$0xff] %v1449_v25  ;;  %1164 = vrot.lane.b32.xlu1 %v2750_v36, %s2230_s21  ;;  %s2253_s21 = smov 58  }
 0x261   : > { %v927_v34 = vpop.permute.xlu1 %926 }
 0x262   : > { %v933_v36 = vsel %vm932_vm1, %v927_v34, %v929_v18 }
 0x263   : > { %v937_v29 = vmul.f32 %v933_v36, %v3127_v48 }
 0x265   : > { %1438 = vrot.lane.b32.xlu0 %v1433_v59, %s2245_s30  ;;  %1300 = vrot.lane.b32.xlu2 %v2819_v62, %s2246_s5  ;;  %v939_v4 = vadd.f32 %v937_v29, %v914_v63  ;;  %v1017_v29 = vld [vmem:[#allocation8 + $0x3] ss:$8 sm:$0x3] }
 0x266   : > { %v1458_v31 = vld.sshfl [vmem:[#allocation1 + $0x10] sm:$0xff pattern:$0x73625140]  ;;  %v2892_v40 = vld.sshfl [vmem:[#allocation1] sm:$0xff pattern:$0x73625140] }
 0x267   : > { %v2895_v20 = vld.sshfl [vmem:[#allocation1 + $0x8] sm:$0xff pattern:$0x73625140]  ;;  %1187 = vrot.lane.b32.xlu1 %v2763_v50, %s2237_s25 }
 0x268   : > { %1480 = vst [vmem:[#allocation1] ss:$4 sm:$0xff] %v1474_v43 }
 0x269   : > { %v931_v35 = vpop.permute.xlu1 %930 }
 0x26a   : > { %v934_v10 = vsel %vm932_vm1, %v929_v18, %v931_v35  ;;  %vm1329_vm1 = vcmask 482304  }
 0x26b   : > { %v938_v51 = vmul.f32 %v934_v10, %v3127_v48  ;;  %v2251_v10 = vmov 6  }
 0x26c   : > { %1979 = vset.pattern.permute.xlu1 %v2251_v10 }
 0x26d   : > { %1463 = vrot.lane.b32.xlu0 %v1458_v31, %s2247_s6  ;;  %1327 = vrot.lane.b32.xlu2 %v2831_v47, %s2238_s26  ;;  %v940_v62 = vadd.f32 %v938_v51, %v915_v16  ;;  %v2933_v16 = vpop.permute.xlu0 %1179  ;;  %v1549_v31 = vld [vmem:[#allocation2] sm:$0x3f] }
 0x26f   : > { %v1482_v60 = vld.sshfl [vmem:[#allocation1 + $0x8] sm:$0xff pattern:$0x73625140]  ;;  %v1481_v6 = vld.sshfl [vmem:[#allocation1] sm:$0xff pattern:$0x73625140]  ;;  %1191 = vrot.lane.b32.xlu1 %v2769_v15, %s2237_s25 }
 0x270   : > { %v2907_v50 = vld.sshfl [vmem:[#allocation1 + $0x10] sm:$0xff pattern:$0x73625140] }
 0x271   : > { %1505 = vst [vmem:[#allocation1] ss:$4 sm:$0xff] %v1499_v19  ;;  %v954_v18 = vpop.permute.xlu1 %953 }
 0x272   : > { %v958_v61 = vsel %vm957_vm2, %v952_v58, %v954_v18  ;;  %v959_v0 = vsel %vm957_vm2, %v954_v18, %v956_v26  ;;  %v1040_v26 = vpop.permute.xlu2 %1039  ;;  %vm1354_vm2 = vcmask 351232  }
 0x273   : > { %v962_v25 = vmul.f32 %v958_v61, %v3128_v22  ;;  %v963_v15 = vmul.f32 %v959_v0, %v3128_v22 }
 0x275   : > { %1486 = vrot.lane.b32.xlu0 %v1482_v60, %s2248_s10  ;;  %1350 = vrot.lane.b32.xlu2 %v2845_v38, %s2249_s11  ;;  %v964_v27 = vadd.f32 %v962_v25, %v939_v4  ;;  %v965_v37 = vadd.f32 %v963_v15, %v940_v62  ;;  %v1002_v48 = vpop.permute.xlu0 %1001  ;;  %v1019_v60 = vperm.slane %v1017_v29, 0 }
 0x277   : > { %1225 = vrot.lane.b32.xlu1 %v2777_v13, %s2233_s23  ;;  %s1770_s23 = sshll.u32 %s2299_s16, 3  ;;  %s217_s16 = scalar_lea.vmem [#allocation9], %s1760_s17 }
 0x278   : > { %v2916_v59 = vld.sshfl [vmem:[#allocation1] sm:$0xff pattern:$0x73625140]  ;;  %v2918_v47 = vld.sshfl [vmem:[#allocation1 + $0x8] sm:$0xff pattern:$0x73625140]  ;;  %s1657_s25 = scalar_lea.hbm %s3107_s3, %s1770_s23 }
 0x279   : > { %v2922_v5 = vld.sshfl [vmem:[#allocation1 + $0x10] sm:$0xff pattern:$0x73625140]  ;;  %v977_v11 = vpop.permute.xlu1 %976 }
 0x27a   : > { %1530 = vst [vmem:[#allocation1] ss:$4 sm:$0xff] %v1524_v49  ;;  %v983_v13 = vsel %vm982_vm3, %v977_v11, %v979_v12  ;;  %v2944_v4 = vpop.permute.xlu2 %1265 }
 0x27b   : > { %v987_v44 = vmul.f32 %v983_v13, %v2621_v46 }
 0x27d   : > { %1484 = vrot.lane.b32.xlu0 %v1481_v6, %s2248_s10  ;;  %1377 = vrot.lane.b32.xlu2 %v2859_v56, %s2240_s28  ;;  %v989_v39 = vadd.f32 %v987_v44, %v964_v27  ;;  %v1020_v6 = vperm.slane %v1017_v29, 1  ;;  %v1063_v49 = vpop.permute.xlu0 %1062 }
 0x27f   : > { %1248 = vrot.lane.b32.xlu1 %v2788_v1, %s2239_s27 }
 0x281   : > { %v1531_v38 = vld.sshfl [vmem:[#allocation1] sm:$0xff pattern:$0x73625140]  ;;  %v2931_v63 = vld.sshfl [vmem:[#allocation1 + $0x8] sm:$0xff pattern:$0x73625140]  ;;  %v981_v36 = vpop.permute.xlu1 %980 }
 0x282   : > { %v2935_v34 = vld.sshfl [vmem:[#allocation1 + $0x10] sm:$0xff pattern:$0x73625140]  ;;  %v984_v43 = vsel %vm982_vm3, %v979_v12, %v981_v36  ;;  %v1067_v25 = vpop.permute.xlu2 %1066  ;;  %vm1379_vm3 = vcmask 220160  }
 0x283   : > { %1555 = vst [vmem:[#allocation1] ss:$4 sm:$0xff] %v1549_v31  ;;  %v988_v1 = vmul.f32 %v984_v43, %v2621_v46 }
 0x285   : > { %1501 = vperm.xlu0 %1983, %v2653_v42   ;;  %1436 = vrot.lane.b32.xlu2 %v2883_v24, %s2245_s30  ;;  %v990_v56 = vadd.f32 %v988_v1, %v965_v37 }
 0x287   : > { %1252 = vrot.lane.b32.xlu1 %v2792_v21, %s2239_s27  ;;  %v3129_v21 = vld [vmem:[#allocation17_spill] sm:$0xff]  ;;  %s1661_s27 = sshll.u32 %s1657_s25, 4  ;;  %s1662_s27 = int_to_ptr.hbm [resolvable:$true] %s1661_s27 }
 0x289   : > { %v1004_v35 = vpop.permute.xlu1 %1003 }
 0x28a   : > { %v1008_v12 = vsel %vm1007_vm4, %v1002_v48, %v1004_v35  ;;  %v1009_v46 = vsel %vm1007_vm4, %v1004_v35, %v1006_v23  ;;  %vm1415_vm4 = vcmask 998400  }
 0x28b   : > { %v1012_v51 = vmul.f32 %v1008_v12, %v3129_v21  ;;  %v1013_v24 = vmul.f32 %v1009_v46, %v3129_v21 }
 0x28d   : > { %1534 = vrot.lane.b32.xlu0 %v1531_v38, %s2250_s20  ;;  %1461 = vrot.lane.b32.xlu2 %v2895_v20, %s2247_s6  ;;  %v1014_v19 = vadd.f32 %v1012_v51, %v989_v39  ;;  %v1015_v62 = vadd.f32 %v1013_v24, %v990_v56  ;;  %v2252_v20 = vmov 27   ;;  %v2254_v56 = vmov 41  }
 0x28e   : > { %1982 = vset.pattern.permute.xlu2 %v2252_v20 }
 0x28f   : > { %1401 = vperm.xlu1 %1979, %v2653_v42   ;;  %v1023_v58 = vmul.f32 %v1019_v60, %v1014_v19  ;;  %v1024_v18 = vmul.f32 %v1020_v6, %v1015_v62 }
 0x291   : > { %v2953_v61 = vadd.f32 %v1023_v58, %v2837_v52  ;;  %v2956_v0 = vadd.f32 %v1024_v18, %v2852_v28  ;;  %v1038_v22 = vpop.permute.xlu1 %1037  ;;  %v1090_v52 = vpop.permute.xlu2 %1089 }
 0x292   : > { %v1044_v28 = vsel %vm1043_vm5, %v1038_v22, %v1040_v26 }
 0x293   : > { %v1048_v11 = vmul.f32 %v1044_v28, %v2719_v32 }
 0x295   : > { %1459 = vrot.lane.b32.xlu2 %v2892_v40, %s2247_s6  ;;  %s2105_s6 = scalar_lea.hbm %s3107_s3, 16 }
 0x297   : > { %1275 = vrot.lane.b32.xlu1 %v2801_v2, %s2236_s24 }
 0x299   : > { %v1042_v15 = vpop.permute.xlu1 %1041  ;;  %v1117_v39 = vpop.permute.xlu2 %1116 }
 0x29a   : > { %v1045_v23 = vsel %vm1043_vm5, %v1040_v26, %v1042_v15  ;;  %vm1440_vm5 = vcmask 867328  }
 0x29b   : > { %v1049_v40 = vmul.f32 %v1045_v23, %v2719_v32  ;;  %v2978_v32 = vpop.permute.xlu0 %1240 }
 0x29d   : > { %1476 = vperm.xlu2 %1982, %v2653_v42  }
 0x29f   : > { %1298 = vrot.lane.b32.xlu1 %v2817_v55, %s2246_s5 }
 0x2a1   : > { %v1065_v27 = vpop.permute.xlu1 %1064 }
 0x2a2   : > { %v1069_v37 = vsel %vm1068_vm6, %v1063_v49, %v1065_v27  ;;  %v1070_v2 = vsel %vm1068_vm6, %v1065_v27, %v1067_v25  ;;  %vm1465_vm6 = vcmask 736256  }
 0x2a3   : > { %v1073_v13 = vmul.f32 %v1069_v37, %v2636_v9  ;;  %v1074_v44 = vmul.f32 %v1070_v2, %v2636_v9 }
 0x2a5   : > { %1513 = vrot.lane.b32.xlu2 %v2922_v5, %s2253_s21  ;;  %v1075_v55 = vadd.f32 %v1073_v13, %v1048_v11  ;;  %v1076_v38 = vadd.f32 %v1074_v44, %v1049_v40  ;;  %v2256_v11 = vmov 20  }
 0x2a6   : > { %1984 = vset.pattern.permute.xlu2 %v2254_v56  ;;  %1981 = vset.pattern.permute.xlu1 %v2256_v11 }
 0x2a7   : > { %1302 = vrot.lane.b32.xlu1 %v2821_v53, %s2246_s5  ;;  %v1140_v53 = vpop.permute.xlu2 %1139 }
 0x2a9   : > { %v1088_v26 = vpop.permute.xlu1 %1087 }
 0x2aa   : > { %v1094_v31 = vsel %vm1093_vm7, %v1088_v26, %v1090_v52 }
 0x2ab   : > { %v1098_v36 = vmul.f32 %v1094_v31, %v2796_v41 }
 0x2ad   : > { %1536 = vrot.lane.b32.xlu2 %v2931_v63, %s2250_s20  ;;  %v1100_v9 = vadd.f32 %v1098_v36, %v1075_v55  ;;  %v2257_v36 = vmov 48  }
 0x2ae   : > { %1985 = vset.pattern.permute.xlu0 %v2257_v36 }
 0x2af   : > { %1325 = vrot.lane.b32.xlu1 %v2829_v8, %s2238_s26  ;;  %v1113_v8 = vpop.permute.xlu0 %1112  ;;  %v2984_v10 = vpop.permute.xlu2 %1315  ;;  %1551 = vperm.xlu0 %1985, %v2653_v42   ;;  %s1659_s26 = sshll.u32 %s217_s16, 4  ;;  %s1660_s26 = int_to_ptr.vmem [resolvable:$true] %s1659_s26 }
 0x2b1   : > { %v1092_v43 = vpop.permute.xlu1 %1091 }
 0x2b2   : > { %v1095_v5 = vsel %vm1093_vm7, %v1090_v52, %v1092_v43  ;;  %vm1490_vm7 = vcmask 605184  }
 0x2b3   : > { %v1099_v1 = vmul.f32 %v1095_v5, %v2796_v41  ;;  %v1558_v41 = vld.sshfl [vmem:[#allocation1 + $0x10] sm:$0xff pattern:$0x73625140] }
 0x2b5   : > { %v1101_v48 = vadd.f32 %v1099_v1, %v1076_v38  ;;  %1526 = vperm.xlu2 %1984, %v2653_v42  }
 0x2b7   : > { %1348 = vrot.lane.b32.xlu1 %v2843_v33, %s2249_s11  ;;  %v1167_v24 = vpop.permute.xlu2 %1166  ;;  %v1163_v22 = vpop.permute.xlu0 %1162 }
 0x2b9   : > { %v1115_v29 = vpop.permute.xlu1 %1114 }
 0x2ba   : > { %v1119_v63 = vsel %vm1118_vm8, %v1113_v8, %v1115_v29  ;;  %v1120_v35 = vsel %vm1118_vm8, %v1115_v29, %v1117_v39  ;;  %vm1515_vm8 = vcmask 474112  }
 0x2bb   : > { %v1123_v12 = vmul.f32 %v1119_v63, %v2730_v57  ;;  %v1124_v46 = vmul.f32 %v1120_v35, %v2730_v57 }
 0x2bd   : > { %v1125_v33 = vadd.f32 %v1123_v12, %v1100_v9  ;;  %v1126_v60 = vadd.f32 %v1124_v46, %v1101_v48  ;;  %1563 = vrot.lane.b32.xlu2 %v1558_v41, %s2255_s18 }
 0x2bf   : > { %1352 = vrot.lane.b32.xlu1 %v2847_v30, %s2249_s11  ;;  %v1190_v18 = vpop.permute.xlu2 %1189  ;;  %v1291_v26 = vpop.permute.xlu0 %1290 }
 0x2c1   : > { %v1138_v6 = vpop.permute.xlu1 %1137 }
 0x2c2   : > { %v1144_v21 = vsel %vm1143_vm9, %v1138_v6, %v1140_v53 }
 0x2c3   : > { %v1148_v51 = vmul.f32 %v1144_v21, %v2867_v7 }
 0x2c5   : > { %v1150_v19 = vadd.f32 %v1148_v51, %v1125_v33 }
 0x2c7   : > { %1375 = vrot.lane.b32.xlu1 %v2856_v14, %s2240_s28  ;;  %v1228_v49 = vpop.permute.xlu2 %1227  ;;  %s1646_s28 = scalar_lea.sflag [#allocation5], %s2374_s9 }
 0x2c9   : > { %v1142_v57 = vpop.permute.xlu1 %1141 }
 0x2ca   : > { %v1145_v62 = vsel %vm1143_vm9, %v1140_v53, %v1142_v57  ;;  %vm1540_vm9 = vcmask 343040  }
 0x2cb   : > { %v1149_v30 = vmul.f32 %v1145_v62, %v2867_v7  ;;  %v1203_v7 = vld [vmem:[#allocation8 + $0x4] ss:$8 sm:$0x3] }
 0x2cc   : > { %v1205_v37 = vperm.slane %v1203_v7, 0  ;;  %v1206_v38 = vperm.slane %v1203_v7, 1 }
 0x2cd   : > { %v1151_v58 = vadd.f32 %v1149_v30, %v1126_v60  ;;  %v1557_v60 = vld.sshfl [vmem:[#allocation1 + $0x8] sm:$0xff pattern:$0x73625140] }
 0x2cf   : > { %1413 = vrot.lane.b32.xlu1 %v2870_v54, %s2242_s29  ;;  %v1251_v55 = vpop.permute.xlu2 %1250  ;;  %s2099_s29 = sshra.s32 %s1662_s27, 4  ;;  %s2100_s29 = int_to_ptr.hbm [resolvable:$true] %s2099_s29 }
 0x2d0   : > { %p2106_p9 = scmp.lt.s32.totalorder %s2100_s29, %s3107_s3 }
 0x2d1   : > { %v1165_v25 = vpop.permute.xlu1 %1164 }
 0x2d2   : > { %v1169_v15 = vsel %vm1168_vm10, %v1163_v22, %v1165_v25  ;;  %v1170_v20 = vsel %vm1168_vm10, %v1165_v25, %v1167_v24  ;;  %v1556_v24 = vld.sshfl [vmem:[#allocation1] sm:$0xff pattern:$0x73625140]  ;;  %vm1565_vm10 = vcmask 211968  }
 0x2d3   : > { %v1173_v52 = vmul.f32 %v1169_v15, %v2808_v45  ;;  %v1174_v14 = vmul.f32 %v1170_v20, %v2808_v45 }
 0x2d5   : > { %v1175_v28 = vadd.f32 %v1173_v52, %v1150_v19  ;;  %v1176_v23 = vadd.f32 %v1174_v14, %v1151_v58 }
 0x2d7   : > { %1434 = vrot.lane.b32.xlu1 %v2881_v3, %s2245_s30  ;;  %v3013_v43 = vpop.permute.xlu2 %1365  ;;  %s2101_s30 = scalar_lea.hbm %s2100_s29, 8 }
 0x2d8   : > { %p2102_p1 = scmp.ne.s32.totalorder %s2100_s29, %s2101_s30  ;;  %p2107_p2 = scmp.lt.s32.totalorder %s2105_s6, %s2101_s30 }
 0x2d9   : > { %v1188_v54 = vpop.permute.xlu1 %1187 }
 0x2da   : > { %v1194_v27 = vsel %vm1193_vm11, %v1188_v54, %v1190_v18  ;;  %p2103_p4 = pnand %p2102_p1, %p2344_p3  ;;  %p2108_p10 = por %p2107_p2, %p2106_p9 }
 0x2db   : > { %v1198_v2 = vmul.f32 %v1194_v27, %v2933_v16 }
 0x2dc   : > { %p2104_p8 = pneg %p2103_p4 }
 0x2dd   : > { %v1200_v40 = vadd.f32 %v1198_v2, %v1175_v28 }
 0x2de   : > { %p2109_p11 = pnand %p2108_p10, %p2104_p8 }
 0x2df   : > { %1451 = vperm.xlu1 %1981, %v2653_v42   ;;  %v1209_v13 = vmul.f32 %v1205_v37, %v1200_v40 }
 0x2e1   : > { %v3004_v45 = vadd.f32 %v1209_v13, %v2953_v61  ;;  %v1192_v3 = vpop.permute.xlu1 %1191 }
 0x2e2   : > { %v1195_v44 = vsel %vm1193_vm11, %v1190_v18, %v1192_v3  ;;  %vm1585_vm11 = vcmask 1041408  }
 0x2e3   : > { %v1199_v39 = vmul.f32 %v1195_v44, %v2933_v16  ;;  %v1224_v16 = vpop.permute.xlu0 %1223 }
 0x2e5   : > { %v1201_v31 = vadd.f32 %v1199_v39, %v1176_v23 }
 0x2e7   : > { %1488 = vrot.lane.b32.xlu1 %v2907_v50, %s2248_s10  ;;  %v1210_v9 = vmul.f32 %v1206_v38, %v1201_v31 }
 0x2e9   : > { %v3011_v53 = vadd.f32 %v1210_v9, %v2956_v0  ;;  %v1226_v61 = vpop.permute.xlu1 %1225  ;;  %v3021_v0 = vpop.permute.xlu2 %1426 }
 0x2ea   : > { %v1230_v5 = vsel %vm1229_vm12, %v1224_v16, %v1226_v61  ;;  %v1231_v8 = vsel %vm1229_vm12, %v1226_v61, %v1228_v49  ;;  %v1389_v61 = vld [vmem:[#allocation8 + $0x5] ss:$8 sm:$0x3] }
 0x2eb   : > { %v1234_v56 = vmul.f32 %v1230_v5, %v2878_v17  ;;  %v1274_v33 = vpop.permute.xlu0 %1273 }
 0x2ef   : > { %1511 = vrot.lane.b32.xlu1 %v2918_v47, %s2253_s21  ;;  %v1235_v47 = vmul.f32 %v1231_v8, %v2878_v17 }
 0x2f1   : > { %v1249_v1 = vpop.permute.xlu1 %1248  ;;  %v1278_v46 = vpop.permute.xlu2 %1277 }
 0x2f2   : > { %v1255_v50 = vsel %vm1254_vm13, %v1249_v1, %v1251_v55  ;;  %v1391_v1 = vperm.slane %v1389_v61, 0 }
 0x2f3   : > { %v1259_v42 = vmul.f32 %v1255_v50, %v2978_v32 }
 0x2f5   : > { %v1261_v48 = vadd.f32 %v1259_v42, %v1234_v56 }
 0x2f7   : > { %1509 = vrot.lane.b32.xlu1 %v2916_v59, %s2253_s21 }
 0x2f9   : > { %v1253_v29 = vpop.permute.xlu1 %1252  ;;  %v1301_v51 = vpop.permute.xlu2 %1300 }
 0x2fa   : > { %v1256_v63 = vsel %vm1254_vm13, %v1251_v55, %v1253_v29 }
 0x2fb   : > { %v1260_v35 = vmul.f32 %v1256_v63, %v2978_v32 }
 0x2fd   : > { %v1262_v12 = vadd.f32 %v1260_v35, %v1235_v47 }
 0x2ff   : > { %1538 = vrot.lane.b32.xlu1 %v2935_v34, %s2250_s20  ;;  %v1341_v34 = vpop.permute.xlu0 %1340 }
 0x301   : > { %v3027_v41 = vpop.permute.xlu1 %1401  ;;  %v1328_v18 = vpop.permute.xlu2 %1327 }
 0x307   : > { %1561 = vrot.lane.b32.xlu1 %v1557_v60, %s2255_s18  ;;  %v1324_v25 = vpop.permute.xlu0 %1323 }
 0x309   : > { %v1276_v59 = vpop.permute.xlu1 %1275  ;;  %v1351_v28 = vpop.permute.xlu2 %1350 }
 0x30a   : > { %v1280_v6 = vsel %vm1279_vm14, %v1274_v33, %v1276_v59  ;;  %v1281_v21 = vsel %vm1279_vm14, %v1276_v59, %v1278_v46 }
 0x30b   : > { %v1284_v17 = vmul.f32 %v1280_v6, %v2944_v4  ;;  %v1285_v32 = vmul.f32 %v1281_v21, %v2944_v4 }
 0x30d   : > { %v1286_v19 = vadd.f32 %v1284_v17, %v1261_v48  ;;  %v1287_v57 = vadd.f32 %v1285_v32, %v1262_v12  ;;  %v1392_v12 = vperm.slane %v1389_v61, 1 }
 0x30f   : > { %1559 = vrot.lane.b32.xlu1 %v1556_v24, %s2255_s18  ;;  %v1374_v4 = vpop.permute.xlu0 %1373 }
 0x311   : > { %v1299_v62 = vpop.permute.xlu1 %1298  ;;  %v1378_v11 = vpop.permute.xlu2 %1377 }
 0x312   : > { %v1305_v30 = vsel %vm1304_vm15, %v1299_v62, %v1301_v51 }
 0x313   : > { %v1309_v58 = vmul.f32 %v1305_v30, %v1291_v26 }
 0x315   : > { %v1311_v22 = vadd.f32 %v1309_v58, %v1286_v19 }
 0x317   : > { %v3035_v13 = vpop.permute.xlu0 %1411 }
 0x319   : > { %v1303_v15 = vpop.permute.xlu1 %1302 }
 0x31a   : > { %v1306_v20 = vsel %vm1304_vm15, %v1301_v51, %v1303_v15 }
 0x31b   : > { %v1310_v52 = vmul.f32 %v1306_v20, %v1291_v26  ;;  %v1437_v26 = vpop.permute.xlu2 %1436 }
 0x31d   : > { %v1312_v14 = vadd.f32 %v1310_v52, %v1287_v57 }
 0x31f   : > { %v1410_v36 = vpop.permute.xlu0 %1409 }
 0x321   : > { %v1326_v23 = vpop.permute.xlu1 %1325 }
 0x322   : > { %v1330_v7 = vsel %vm1329_vm1, %v1324_v25, %v1326_v23  ;;  %v1331_v49 = vsel %vm1329_vm1, %v1326_v23, %v1328_v18 }
 0x323   : > { %v1334_v54 = vmul.f32 %v1330_v7, %v2984_v10  ;;  %v1335_v27 = vmul.f32 %v1331_v49, %v2984_v10  ;;  %v1462_v42 = vpop.permute.xlu2 %1461  ;;  %v1416_v49 = vsel %vm1415_vm4, %v1410_v36, %v3035_v13 }
 0x325   : > { %v1336_v37 = vadd.f32 %v1334_v54, %v1311_v22  ;;  %v1337_v2 = vadd.f32 %v1335_v27, %v1312_v14 }
 0x327   : > { %v1439_v29 = vpop.permute.xlu0 %1438 }
 0x328   : > { %v1442_v30 = vsel %vm1440_vm5, %v1437_v26, %v1439_v29 }
 0x329   : > { %v1349_v40 = vpop.permute.xlu1 %1348  ;;  %v1446_v20 = vmul.f32 %v1442_v30, %v3021_v0 }
 0x32a   : > { %v1355_v3 = vsel %vm1354_vm2, %v1349_v40, %v1351_v28 }
 0x32b   : > { %v1359_v44 = vmul.f32 %v1355_v3, %v1341_v34  ;;  %v1460_v46 = vpop.permute.xlu2 %1459 }
 0x32c   : > { %v1466_v54 = vsel %vm1465_vm6, %v1460_v46, %v1462_v42 }
 0x32d   : > { %v1361_v55 = vadd.f32 %v1359_v44, %v1336_v37  ;;  %v1420_v37 = vmul.f32 %v1416_v49, %v3027_v41 }
 0x32f   : > { %v1464_v60 = vpop.permute.xlu0 %1463 }
 0x330   : > { %v1467_v22 = vsel %vm1465_vm6, %v1462_v42, %v1464_v60 }
 0x331   : > { %v1353_v38 = vpop.permute.xlu1 %1352 }
 0x332   : > { %v1356_v39 = vsel %vm1354_vm2, %v1351_v28, %v1353_v38 }
 0x333   : > { %v1360_v31 = vmul.f32 %v1356_v39, %v1341_v34  ;;  %v1477_v21 = vpop.permute.xlu2 %1476 }
 0x335   : > { %v1362_v9 = vadd.f32 %v1360_v31, %v1337_v2 }
 0x339   : > { %v1376_v16 = vpop.permute.xlu1 %1375 }
 0x33a   : > { %v1380_v10 = vsel %vm1379_vm3, %v1374_v4, %v1376_v16  ;;  %v1381_v5 = vsel %vm1379_vm3, %v1376_v16, %v1378_v11 }
 0x33b   : > { %v1384_v50 = vmul.f32 %v1380_v10, %v3013_v43  ;;  %v1385_v56 = vmul.f32 %v1381_v5, %v3013_v43  ;;  %v1487_v43 = vpop.permute.xlu0 %1486  ;;  %v1514_v32 = vpop.permute.xlu2 %1513 }
 0x33d   : > { %v1386_v48 = vadd.f32 %v1384_v50, %v1361_v55  ;;  %v1387_v8 = vadd.f32 %v1385_v56, %v1362_v9 }
 0x33f   : > { %v1395_v63 = vmul.f32 %v1391_v1, %v1386_v48  ;;  %v1396_v33 = vmul.f32 %v1392_v12, %v1387_v8 }
 0x341   : > { %v3040_v47 = vadd.f32 %v1395_v63, %v3004_v45  ;;  %v1414_v35 = vpop.permute.xlu1 %1413  ;;  %v3043_v6 = vadd.f32 %v1396_v33, %v3011_v53 }
 0x342   : > { %v1417_v62 = vsel %vm1415_vm4, %v3035_v13, %v1414_v35 }
 0x343   : > { %v1485_v24 = vpop.permute.xlu0 %1484  ;;  %v1537_v57 = vpop.permute.xlu2 %1536  ;;  %v1421_v58 = vmul.f32 %v1417_v62, %v3027_v41 }
 0x345   : > { %v1448_v4 = vadd.f32 %v1446_v20, %v1421_v58 }
 0x349   : > { %v1435_v59 = vpop.permute.xlu1 %1434 }
 0x34a   : > { %v1441_v25 = vsel %vm1440_vm5, %v1435_v59, %v1437_v26  ;;  %v1491_v26 = vsel %vm1490_vm7, %v1485_v24, %v1487_v43 }
 0x34b   : > { %v1502_v34 = vpop.permute.xlu0 %1501  ;;  %v1527_v53 = vpop.permute.xlu2 %1526  ;;  %v1445_v23 = vmul.f32 %v1441_v25, %v3021_v0  ;;  %v1575_v0 = vld [vmem:[#allocation8 + $0x6] ss:$8 sm:$0x3]  ;;  %v1495_v61 = vmul.f32 %v1491_v26, %v1477_v21 }
 0x34c   : > { %v1578_v5 = vperm.slane %v1575_v0, 1  ;;  %v1577_v46 = vperm.slane %v1575_v0, 0 }
 0x34d   : > { %v1447_v3 = vadd.f32 %v1445_v23, %v1420_v37 }
 0x351   : > { %v1452_v51 = vpop.permute.xlu1 %1451 }
 0x352   : > { %v1471_v52 = vmul.f32 %v1467_v22, %v1452_v51  ;;  %v1470_v2 = vmul.f32 %v1466_v54, %v1452_v51 }
 0x353   : > { %v1535_v18 = vpop.permute.xlu0 %1534  ;;  %v1564_v13 = vpop.permute.xlu2 %1563 }
 0x354   : > { %v1473_v11 = vadd.f32 %v1471_v52, %v1448_v4  ;;  %v1472_v31 = vadd.f32 %v1470_v2, %v1447_v3  ;;  %v1541_v8 = vsel %vm1540_vm9, %v1535_v18, %v1537_v57 }
 0x355   : > { %v1545_v29 = vmul.f32 %v1541_v8, %v1527_v53 }
 0x356   : > { %v1497_v50 = vadd.f32 %v1495_v61, %v1472_v31 }
 0x359   : > { %v1489_v17 = vpop.permute.xlu1 %1488 }
 0x35a   : > { %v1492_v15 = vsel %vm1490_vm7, %v1487_v43, %v1489_v17 }
 0x35b   : > { %v1496_v7 = vmul.f32 %v1492_v15, %v1477_v21  ;;  %v1552_v39 = vpop.permute.xlu0 %1551 }
 0x35d   : > { %v1498_v44 = vadd.f32 %v1496_v7, %v1473_v11 }
 0x361   : > { %v1512_v19 = vpop.permute.xlu1 %1511 }
 0x362   : > { %v1517_v28 = vsel %vm1515_vm8, %v1512_v19, %v1514_v32 }
 0x363   : > { %v1521_v40 = vmul.f32 %v1517_v28, %v1502_v34 }
 0x365   : > { %v1523_v36 = vadd.f32 %v1521_v40, %v1498_v44 }
 0x369   : > { %v1510_v45 = vpop.permute.xlu1 %1509 }
 0x36a   : > { %v1516_v38 = vsel %vm1515_vm8, %v1510_v45, %v1512_v19 }
 0x36b   : > { %v1520_v16 = vmul.f32 %v1516_v38, %v1502_v34 }
 0x36d   : > { %v1522_v42 = vadd.f32 %v1520_v16, %v1497_v50 }
 0x36f   : > { %v1547_v60 = vadd.f32 %v1545_v29, %v1522_v42 }
 0x371   : > { %v1539_v14 = vpop.permute.xlu1 %1538 }
 0x372   : > { %v1542_v27 = vsel %vm1540_vm9, %v1537_v57, %v1539_v14 }
 0x373   : > { %v1546_v55 = vmul.f32 %v1542_v27, %v1527_v53 }
 0x375   : > { %v1548_v10 = vadd.f32 %v1546_v55, %v1523_v36 }
 0x379   : > { %v1562_v9 = vpop.permute.xlu1 %1561 }
 0x37a   : > { %v1567_v41 = vsel %vm1565_vm10, %v1562_v9, %v1564_v13 }
 0x37b   : > { %v1571_v1 = vmul.f32 %v1567_v41, %v1552_v39  ;;  %v3130_v41 = vld [vmem:[#allocation13_spill] sm:$0xff] }
 0x37d   : > { %v1573_v56 = vadd.f32 %v1571_v1, %v1548_v10 }
 0x37f   : > { %v1582_v48 = vmul.f32 %v1578_v5, %v1573_v56 }
 0x381   : > { %v1584_v63 = vadd.f32 %v1582_v48, %v3043_v6  ;;  %v1560_v35 = vpop.permute.xlu1 %1559 }
 0x382   : > { %v1566_v12 = vsel %vm1565_vm10, %v1560_v35, %v1562_v9 }
 0x383   : > { %v1593_v33 = vsel %vm1585_vm11, %v1584_v63, 0.0  ;;  %v1570_v59 = vmul.f32 %v1566_v12, %v1552_v39 }
 0x384   : > { %v1594_v21 = vrot.slane %v1593_v33, 4 }
 0x385   : > { %v1572_v51 = vadd.f32 %v1570_v59, %v1547_v60 }
 0x386   : > { %v1595_v43 = vadd.f32 %v1594_v21, %v1593_v33 }
 0x387   : > { %v1581_v17 = vmul.f32 %v1577_v46, %v1572_v51 }
 0x388   : > { %v1596_v32 = vrot.slane %v1595_v43, 2 }
 0x389   : > { %v1583_v24 = vadd.f32 %v1581_v17, %v3040_v47 }
 0x38a   : > { %v1597_v19 = vadd.f32 %v1596_v32, %v1595_v43 }
 0x38b   : > { %v1586_v57 = vsel %vm1585_vm11, %v1583_v24, 0.0 }
 0x38c   : > { %v1598_v34 = vrot.slane %v1597_v19, 1  ;;  %v1587_v6 = vrot.slane %v1586_v57, 4 }
 0x38e   : > { %v1599_v45 = vadd.f32 %v1598_v34, %v1597_v19  ;;  %v1588_v62 = vadd.f32 %v1587_v6, %v1586_v57 }
 0x390   : > { %v1601_v30 = vsub.f32 0.0, %v1599_v45  ;;  %v1589_v53 = vrot.slane %v1588_v62, 2 }
 0x392   : > { %v1604_v58 = vmul.f32 1.442695, %v1601_v30  ;;  %v1590_v18 = vadd.f32 %v1589_v53, %v1588_v62 }
 0x394   : > { %1986 = vpow2.f32 %v1604_v58  ;;  %v1591_v22 = vrot.slane %v1590_v18, 1 }
 0x396   : > { %v1592_v25 = vadd.f32 %v1591_v22, %v1590_v18 }
 0x398   : > { %v1600_v15 = vsub.f32 0.0, %v1592_v25 }
 0x39a   : > { %v1987_v20 = vpop.eup %1986  ;;  %v1602_v52 = vmul.f32 1.442695, %v1600_v15 }
 0x39b   : > { %v1607_v14 = vadd.f32 1.0, %v1987_v20 }
 0x39c   : > { %1988 = vpow2.f32 %v1602_v52 }
 0x39d   : > { %1990 = vrcp.f32 %v1607_v14  ;;  %v1634_v37 = vand.u32 2147483648, %v1607_v14  ;;  %vm1628_vm13 = vweird.f32 %v1607_v14  ;;  %v1632_v11 = vand.u32 2147483647, %v1607_v14 }
 0x39f   : > { %v1635_v55 = vor.u32 1.1754944e-38, %v1634_v37  ;;  %vm1633_vm1 = vcmp.eq.f32.partialorder %v1632_v11, 8.507059e+37 }
 0x3a2   : > { %v1989_v47 = vpop.eup %1988 }
 0x3a3   : > { %v1991_v28 = vpop.eup %1990  ;;  %v1606_v4 = vadd.f32 1.0, %v1989_v47 }
 0x3a4   : > { %v1624_v23 = vmul.f32 %v1991_v28, %v1607_v14  ;;  %vm1629_vm12 = vweird.f32 %v1991_v28 }
 0x3a5   : > { %1992 = vrcp.f32 %v1606_v4  ;;  %vm1630_vm14 = vmor %vm1628_vm13, %vm1629_vm12  ;;  %v1619_v44 = vand.u32 2147483648, %v1606_v4  ;;  %v1617_v0 = vand.u32 2147483647, %v1606_v4  ;;  %vm1613_vm2 = vweird.f32 %v1606_v4 }
 0x3a6   : > { %v1625_v7 = vsub.f32 1.0, %v1624_v23 }
 0x3a7   : > { %v1620_v13 = vor.u32 1.1754944e-38, %v1619_v44  ;;  %vm1618_vm4 = vcmp.eq.f32.partialorder %v1617_v0, 8.507059e+37 }
 0x3a8   : > { %v1626_v49 = vmul.f32 %v1991_v28, %v1625_v7 }
 0x3aa   : > { %v1627_v54 = vadd.f32 %v1991_v28, %v1626_v49 }
 0x3ab   : > { %v1993_v27 = vpop.eup %1992 }
 0x3ac   : > { %v1609_v2 = vmul.f32 %v1993_v27, %v1606_v4  ;;  %v1631_v3 = vsel %vm1630_vm14, %v1991_v28, %v1627_v54  ;;  %vm1614_vm15 = vweird.f32 %v1993_v27 }
 0x3ad   : > { %v1636_v39 = vsel %vm1633_vm1, %v1635_v55, %v1631_v3  ;;  %vm1615_vm3 = vmor %vm1613_vm2, %vm1614_vm15 }
 0x3ae   : > { %v1610_v40 = vsub.f32 1.0, %v1609_v2  ;;  %v1640_v36 = vrot.slane %v1636_v39, 4 }
 0x3b0   : > { %v1611_v38 = vmul.f32 %v1993_v27, %v1610_v40 }
 0x3b2   : > { %v1612_v26 = vadd.f32 %v1993_v27, %v1611_v38 }
 0x3b4   : > { %v1616_v31 = vsel %vm1615_vm3, %v1993_v27, %v1612_v26 }
 0x3b5   : > { %v1621_v9 = vsel %vm1618_vm4, %v1620_v13, %v1616_v31 }
 0x3b6   : > { %v1641_v61 = vsel %vm225_vm0, %v1621_v9, %v1640_v36 }
 0x3b7   : > { %v1643_v16 = vmul.f32 %v1641_v61, %v3130_v41 }
 0x3b9   : > { %1644 = vst [vmem:[%s217_s16] sm:$0xff] %v1643_v16 }
 0x3ba   : > { %2112 = shalt.err (!%p2109_p11)
}
 0x3bb   : > { %1781 = dma.vmem_to_hbm [thread:$0]  (%p2344_p3), %s1660_s26, 128, %s1662_s27, %s1646_s28  }
 0x3bc PF: > { %s1673_s9 = sand.u32 1, %s2143_s12   ;;  %p3131_p12 = scmp.ge.s32.totalorder %s2155_s15, 2 }
 0x3bd   : > { %s1674_s20 = scalar_lea.sflag [#allocation5], %s1673_s9 }
 0x3be   : > { %p1795_p13 = pnand %p3131_p12, %p2313_p6 }
 0x3c0   : > { %p1796_p0 = pneg %p1795_p13 }
 0x3c2   : > { %2138 = dma.done.wait (%p1796_p0), %s1674_s20, 128  }
 0x3c3   : > { %2140 = vsyncadd (%p1796_p0), %s1674_s20, 4294967168  ;;  %p17_p5 = scmp.ge.s32.totalorder %s2334_s4, 4   ;;  %s3132_s12 = smov %s2147_s13 }
 0x3c4   : > { %s3133_s13 = smov %s2151_s14  ;;  %s3134_s14 = smov %s2350_s8 }
 0x3c5   : > { %s3135_s15 = smov %s2334_s4  ;;  %19 = sbr.rel (!%p17_p5) target bundleno = 6 (0x6), region = 92 }
 0x3ca   :  { %1680 = vsyncpa [#allocation4], 1 }
 0x3cb   :  { %1682 = vsyncpa [#allocation4 + $0x1], 1 }
 0x3cc   :  { %1683 = vsyncpa [#allocation7], 1 }
 0x3cd   :  { %1684 = vsyncpa [#allocation5], 1 }
 0x3ce   :  { %1686 = vsyncpa [#allocation5 + $0x1], 1 }

</bundles_post_ra>
